<compile_context>
chip_gen: v6e
topology: v6e:2x2x1
jax: 0.10.0
libtpu: 0.0.40
codegen_flags: <defaults>
</compile_context>

<pallas_src>
import jax
import jax.numpy as jnp
from jax.experimental import pallas as pl
from jax.experimental.pallas import tpu as pltpu

# ---------------- model dimensions -------------------------------------------
B, CIN, H, W = 2, 4, 16, 16       # input (NCHW): (2, 4, 16, 16)
C1, C2 = 8, 16                    # conv channel widths
LATENT = 32                       # bottleneck size
NCLS = 10                         # classifier head size
NOUT = 128                        # lane-dense padded classifier width
FLAT = C2 * H * W                 # 4096
BN_EPS = 1e-5
BH = B * H                        # 32 packed rows


# ------------------------------- Pallas kernel -------------------------------
def vae_fwd_kernel(x_ref,          # (32, 64)    f32 row-packed input
                   eps_ref,        # (2, 32)     f32 reparam noise
                   w1b_ref,        # (192, 128)  bf16 banded conv1 weight
                   w2b_ref,        # (384, 256)  bf16 banded conv2 weight
                   wml_hbm_ref,    # (4096, 64)  bf16 fused mu|log_var weight (HBM)
                   wc_ref,         # (32, 128)   f32 padded classifier weight
                   sm_ref,         # (8, 256)    f32 packed small params
                   bnm_ref,        # (128, 128)  f32 fused BN reduce+broadcast / n
                   msk_ref,        # (32, 256)   f32 row-shift validity masks
                   y_ref,          # out: (2, 128) f32 (lane-dense, padded)
                   wml_vmem,       # scratch: (4096, 64) bf16 VMEM
                   dma_sem):       # scratch: DMA semaphore
    # Kick off the bottleneck-weight DMA; it overlaps the conv/BN compute.
    wml_cp = pltpu.make_async_copy(wml_hbm_ref, wml_vmem, dma_sem)
    wml_cp.start()

    sm = sm_ref[...]                                   # (8, 256)
    b1_t = sm[0:1, :W * C1]                            # (1, 128) tiled conv1 bias
    g_t = sm[1:2, :W * C1]                             # (1, 128) tiled gamma
    be_t = sm[2:3, :W * C1]                            # (1, 128) tiled beta
    b2_t = sm[3:4, :W * C2]                            # (1, 256) tiled conv2 bias
    bml = sm[4:5, :2 * LATENT]                         # (1, 64)  [bmu | blv]
    bc_p = sm[5:6, :NOUT]                              # (1, 128) padded bc

    msk = msk_ref[...]                                 # (32, 256)

    def shift_cat(a, width):
        """a: (BH, width) packed act -> (BH, 3*width) kh=-1/0/+1 row shifts.

        Precomputed masks zero rows whose shift would cross the image top /
        bottom (which, with the b*H+h row packing, also covers batch
        boundaries) — reproducing the conv's zero padding along H.
        """
        up = pltpu.roll(a, 1, axis=0) * msk[:, :width]              # row h-1
        dn = pltpu.roll(a, BH - 1, axis=0) * msk[:, 128:128 + width]  # row h+1
        return jnp.concatenate([up, a, dn], axis=1)

    # ---- Conv2d(CIN->C1, k3, s1, p1): one banded matmul ---------------------
    x = x_ref[...]                                     # (32, 64) f32
    h1 = jnp.dot(shift_cat(x, W * CIN).astype(jnp.bfloat16), w1b_ref[...],
                 preferred_element_type=jnp.float32) + b1_t      # (32, 128) f32

    # ---- BatchNorm2d (training: biased batch stats) --------------------------
    # One fused per-channel reduce+broadcast matmul (matrix pre-divided by n),
    # then a fused affine (scale/shift) + ReLU.
    s = jnp.concatenate([jnp.sum(h1, axis=0, keepdims=True),
                         jnp.sum(h1 * h1, axis=0, keepdims=True)],
                        axis=0)                        # (2, 128)
    m = jnp.dot(s, bnm_ref[...], preferred_element_type=jnp.float32)  # (2, 128)
    mean_f = m[0:1, :]
    var_f = m[1:2, :] - mean_f * mean_f
    scale_f = jax.lax.rsqrt(var_f + BN_EPS) * g_t
    shift_f = be_t - mean_f * scale_f
    h1 = jnp.maximum(h1 * scale_f + shift_f, 0.0)      # BN affine + ReLU

    # ---- Conv2d(C1->C2, k3, s1, p1): one banded matmul + ReLU ---------------
    h2 = jnp.maximum(
        jnp.dot(shift_cat(h1, W * C1).astype(jnp.bfloat16), w2b_ref[...],
                preferred_element_type=jnp.float32) + b2_t, 0.0)  # (32, 256) f32

    # ---- bottleneck: fused mu / log_var matmul + reparameterisation ---------
    flat = h2.reshape(B, H * W * C2)                   # (2, 4096), relayout
    wml_cp.wait()                                      # weight now in VMEM
    ml = jnp.dot(flat.astype(jnp.bfloat16), wml_vmem[...],
                 preferred_element_type=jnp.float32) + bml        # (2, 64)
    mu = ml[:, :LATENT]
    lv = ml[:, LATENT:2 * LATENT]
    z = mu + jnp.exp(0.5 * lv) * eps_ref[...]

    # ---- classifier head -> lane-dense padded y_hat --------------------------
    y_ref[...] = (jnp.dot(z, wc_ref[...], preferred_element_type=jnp.float32)
                  + bc_p).astype(y_ref.dtype)


# -------------------------- one-time weight repacking -------------------------
def _conv_band(w):
    """w: (cout, cin, 3, 3) OIHW -> banded matmul weight (3*W*cin, W*cout).

    row index = kh*(W*cin) + wi*cin + ci, col index = wo*cout + co, with
    band[kh, wi, ci, wo, co] = w[co, ci, kh, wi-wo+1] if |wi-wo| <= 1 else 0,
    so shift_cat(x_packed) @ band == conv2d(x, w, stride=1, pad=1) packed.
    """
    cin, cout = w.shape[1], w.shape[0]
    w_t = jnp.transpose(w, (2, 3, 1, 0))                      # (kh, kw, ci, co)
    dw = jnp.arange(W)[:, None] - jnp.arange(W)[None, :] + 1  # (wi, wo)
    valid = ((dw >= 0) & (dw <= 2)).astype(w.dtype)
    g = w_t[:, jnp.clip(dw, 0, 2), :, :]                      # (kh, wi, wo, ci, co)
    g = g * valid[None, :, :, None, None]
    g = jnp.transpose(g, (0, 1, 3, 2, 4))                     # (kh, wi, ci, wo, co)
    return g.reshape(3 * W * cin, W * cout)


def _perm_linear(wl):
    """(LATENT, C2*H*W) NCHW-flatten columns -> (FLAT, LATENT) in (h,w,c) order."""
    return (wl.reshape(-1, C2, H, W).transpose(0, 2, 3, 1)
              .reshape(-1, H * W * C2).T)


def pack_params(params):
    """One-time (out-of-jit-path) repacking of all weights for the kernel."""
    (w1, b1, gamma, beta, w2, b2, wmu, bmu, wlv, blv, wc, bc) = params

    w1_band = _conv_band(w1).astype(jnp.bfloat16)             # (192, 128)
    w2_band = _conv_band(w2).astype(jnp.bfloat16)             # (384, 256)
    wml = jnp.concatenate([_perm_linear(wmu), _perm_linear(wlv)],
                          axis=1).astype(jnp.bfloat16)        # (4096, 64)
    wc_pad = jnp.zeros((LATENT, NOUT), jnp.float32).at[:, :NCLS].set(wc.T)

    # packed small params: rows 0-2 b1/gamma/beta (lane-tiled), row 3 b2,
    # row 4 [bmu|blv], row 5 bc (padded).  All kept in f32.
    sm = jnp.zeros((8, 256), jnp.float32)
    sm = sm.at[0, :W * C1].set(jnp.tile(b1, W))
    sm = sm.at[1, :W * C1].set(jnp.tile(gamma, W))
    sm = sm.at[2, :W * C1].set(jnp.tile(beta, W))
    sm = sm.at[3, :W * C2].set(jnp.tile(b2, W))
    sm = sm.at[4, :2 * LATENT].set(jnp.concatenate([bmu, blv]))
    sm = sm.at[5, :NCLS].set(bc)

    # fused per-channel reduce + broadcast matrix for BN batch stats (÷ n baked in)
    lane = jnp.arange(W * C1)
    bn_mat = (((lane[:, None] % C1) == (lane[None, :] % C1))
              .astype(jnp.float32)) / float(B * H * W)        # (128, 128)

    # row-shift validity masks: lanes [0:128] = "h-1 valid", [128:256] = "h+1 valid"
    hrow = jnp.arange(BH) % H
    msk = jnp.concatenate(
        [jnp.broadcast_to((hrow != 0).astype(jnp.float32)[:, None], (BH, 128)),
         jnp.broadcast_to((hrow != H - 1).astype(jnp.float32)[:, None], (BH, 128))],
        axis=1)                                               # (32, 256)

    return (w1_band, w2_band, wml, wc_pad, sm, bn_mat, msk)


# ------------------------------- JAX wrapper ---------------------------------
@jax.jit
def surprisenet_vae_forward(x_nchw, eps, packed):
    """x_nchw: (B, CIN, H, W) f32; eps: (B, LATENT) f32. Returns y_hat (B, NCLS)."""
    w1_band, w2_band, wml, wc_pad, sm, bn_mat, msk = packed

    # Only per-call data transform left in the jit path: pack the input rows.
    x_packed = jnp.transpose(x_nchw, (0, 2, 3, 1)).reshape(BH, W * CIN)

    vmem = pl.BlockSpec(memory_space=pltpu.MemorySpace.VMEM)
    y_pad = pl.pallas_call(
        vae_fwd_kernel,
        out_shape=jax.ShapeDtypeStruct((B, NOUT), jnp.float32),
        in_specs=[vmem, vmem, vmem, vmem,
                  pl.BlockSpec(memory_space=pl.ANY),   # wml stays in HBM
                  vmem, vmem, vmem, vmem],
        out_specs=vmem,
        scratch_shapes=[pltpu.VMEM((FLAT, 2 * LATENT), jnp.bfloat16),
                        pltpu.SemaphoreType.DMA(())],
    )(x_packed, eps, w1_band, w2_band, wml, wc_pad, sm, bn_mat, msk)
    return y_pad[:, :NCLS]


# -------------------------- plain-JAX reference (NCHW, f32) -------------------
def reference_forward(x_nchw, params, eps):
    (w1, b1, gamma, beta, w2, b2, wmu, bmu, wlv, blv, wc, bc) = params
    dn = ("NCHW", "OIHW", "NCHW")
    y = jax.lax.conv_general_dilated(x_nchw, w1, (1, 1), ((1, 1), (1, 1)),
                                     dimension_numbers=dn)
    y = y + b1[None, :, None, None]
    mean = jnp.mean(y, axis=(0, 2, 3), keepdims=True)
    var = jnp.var(y, axis=(0, 2, 3), keepdims=True)          # biased (training BN)
    y = (y - mean) / jnp.sqrt(var + BN_EPS) * gamma[None, :, None, None] \
        + beta[None, :, None, None]
    y = jnp.maximum(y, 0.0)
    y = jax.lax.conv_general_dilated(y, w2, (1, 1), ((1, 1), (1, 1)),
                                     dimension_numbers=dn)
    y = jnp.maximum(y + b2[None, :, None, None], 0.0)
    flat = y.reshape(y.shape[0], -1)                          # NCHW flatten
    mu = flat @ wmu.T + bmu
    lv = flat @ wlv.T + blv
    z = mu + jnp.exp(0.5 * lv) * eps
    return z @ wc.T + bc


# ------------------------------------ main ------------------------------------
if __name__ == "__main__":
    key = jax.random.PRNGKey(0)
    ks = jax.random.split(key, 16)

    # Deterministic synthetic parameters (PyTorch shape conventions).
    w1 = 0.10 * jax.random.normal(ks[0], (C1, CIN, 3, 3), jnp.float32)
    b1 = 0.10 * jax.random.normal(ks[1], (C1,), jnp.float32)
    gamma = 1.0 + 0.10 * jax.random.normal(ks[2], (C1,), jnp.float32)
    beta = 0.10 * jax.random.normal(ks[3], (C1,), jnp.float32)
    w2 = 0.05 * jax.random.normal(ks[4], (C2, C1, 3, 3), jnp.float32)
    b2 = 0.05 * jax.random.normal(ks[5], (C2,), jnp.float32)
    wmu = 0.02 * jax.random.normal(ks[6], (LATENT, FLAT), jnp.float32)
    bmu = 0.02 * jax.random.normal(ks[7], (LATENT,), jnp.float32)
    wlv = 0.02 * jax.random.normal(ks[8], (LATENT, FLAT), jnp.float32)
    blv = 0.02 * jax.random.normal(ks[9], (LATENT,), jnp.float32)
    wc = 0.10 * jax.random.normal(ks[10], (NCLS, LATENT), jnp.float32)
    bc = 0.10 * jax.random.normal(ks[11], (NCLS,), jnp.float32)
    params = (w1, b1, gamma, beta, w2, b2, wmu, bmu, wlv, blv, wc, bc)

    x = jax.random.normal(ks[12], (B, CIN, H, W), jnp.float32)
    eps = jax.random.normal(ks[13], (B, LATENT), jnp.float32)   # reparam noise

    # One-time weight repacking (outside the jitted per-call path).
    packed = jax.block_until_ready(pack_params(params))

    y_hat = surprisenet_vae_forward(x, eps, packed)
    y_hat = jax.block_until_ready(y_hat)

    y_ref = reference_forward(x, params, eps)
    assert y_hat.shape == (B, NCLS)
    # Tolerance accounts for bf16 weight streaming (f32 MXU accumulation).
    assert jnp.allclose(y_hat, y_ref, atol=2e-2, rtol=2e-2), (
        f"max err {jnp.max(jnp.abs(y_hat - y_ref))}")

    print("KERNEL_OK")
</pallas_src>

<mosaic_0001>
module attributes {stable_mosaic.version = 11 : i64} {
  func.func @vae_fwd_kernel(%arg0: memref<32x64xf32, #tpu.memory_space<vmem>>, %arg1: memref<2x32xf32, #tpu.memory_space<vmem>>, %arg2: memref<192x128xbf16, #tpu.memory_space<vmem>>, %arg3: memref<384x256xbf16, #tpu.memory_space<vmem>>, %arg4: memref<4096x64xbf16, #tpu.memory_space<any>>, %arg5: memref<32x128xf32, #tpu.memory_space<vmem>>, %arg6: memref<8x256xf32, #tpu.memory_space<vmem>>, %arg7: memref<128x128xf32, #tpu.memory_space<vmem>>, %arg8: memref<32x256xf32, #tpu.memory_space<vmem>>, %arg9: memref<2x128xf32, #tpu.memory_space<vmem>>, %arg10: memref<4096x64xbf16, #tpu.memory_space<vmem>>, %arg11: memref<!tpu.dma_semaphore, #tpu.memory_space<semaphore_mem>>) attributes {dimension_semantics = [], scalar_prefetch = 0 : i64, scratch_operands = 2 : i64, tpu.core_type = #tpu.core_type<tc>} {
    tpu.enqueue_dma source(%arg4 : memref<4096x64xbf16, #tpu.memory_space<any>>) target(%arg10 : memref<4096x64xbf16, #tpu.memory_space<vmem>>) target_semaphore(%arg11 : memref<!tpu.dma_semaphore, #tpu.memory_space<semaphore_mem>>)
    %c0 = arith.constant 0 : index
    %c0_0 = arith.constant 0 : index
    %0 = vector.load %arg6[%c0, %c0_0] : memref<8x256xf32, #tpu.memory_space<vmem>>, vector<8x256xf32>
    %1 = vector.extract_strided_slice %0 {offsets = [0, 0], sizes = [1, 128], strides = [1, 1]} : vector<8x256xf32> to vector<1x128xf32>
    %2 = vector.extract_strided_slice %0 {offsets = [1, 0], sizes = [1, 128], strides = [1, 1]} : vector<8x256xf32> to vector<1x128xf32>
    %3 = vector.extract_strided_slice %0 {offsets = [2, 0], sizes = [1, 128], strides = [1, 1]} : vector<8x256xf32> to vector<1x128xf32>
    %4 = vector.extract_strided_slice %0 {offsets = [3, 0], sizes = [1, 256], strides = [1, 1]} : vector<8x256xf32> to vector<1x256xf32>
    %5 = vector.extract_strided_slice %0 {offsets = [4, 0], sizes = [1, 64], strides = [1, 1]} : vector<8x256xf32> to vector<1x64xf32>
    %6 = vector.extract_strided_slice %0 {offsets = [5, 0], sizes = [1, 128], strides = [1, 1]} : vector<8x256xf32> to vector<1x128xf32>
    %c0_1 = arith.constant 0 : index
    %c0_2 = arith.constant 0 : index
    %7 = vector.load %arg8[%c0_1, %c0_2] : memref<32x256xf32, #tpu.memory_space<vmem>>, vector<32x256xf32>
    %c0_3 = arith.constant 0 : index
    %c0_4 = arith.constant 0 : index
    %8 = vector.load %arg0[%c0_3, %c0_4] : memref<32x64xf32, #tpu.memory_space<vmem>>, vector<32x64xf32>
    %c1_i32 = arith.constant 1 : i32
    %9 = tpu.dynamic_rotate %8 by %c1_i32 dim 0 : vector<32x64xf32>, i32 -> vector<32x64xf32>
    %10 = vector.extract_strided_slice %7 {offsets = [0, 0], sizes = [32, 64], strides = [1, 1]} : vector<32x256xf32> to vector<32x64xf32>
    %11 = arith.mulf %9, %10 : vector<32x64xf32>
    %c31_i32 = arith.constant 31 : i32
    %12 = tpu.dynamic_rotate %8 by %c31_i32 dim 0 : vector<32x64xf32>, i32 -> vector<32x64xf32>
    %13 = vector.extract_strided_slice %7 {offsets = [0, 128], sizes = [32, 64], strides = [1, 1]} : vector<32x256xf32> to vector<32x64xf32>
    %14 = arith.mulf %12, %13 : vector<32x64xf32>
    %15 = tpu.concatenate %11, %8, %14 in 1 : vector<32x64xf32>, vector<32x64xf32>, vector<32x64xf32> -> vector<32x192xf32>
    %16 = arith.truncf %15 : vector<32x192xf32> to vector<32x192xbf16>
    %c0_5 = arith.constant 0 : index
    %c0_6 = arith.constant 0 : index
    %17 = vector.load %arg2[%c0_5, %c0_6] : memref<192x128xbf16, #tpu.memory_space<vmem>>, vector<192x128xbf16>
    %cst = arith.constant dense<0.000000e+00> : vector<32x128xf32>
    %18 = tpu.matmul %16, %17, %cst {dimension_numbers = #tpu.dot_dimension_numbers<[1], [0], [0], [1], [0, 0, 1, 1], [], []>} : vector<32x192xbf16>, vector<192x128xbf16>, vector<32x128xf32> -> vector<32x128xf32>
    %19 = vector.broadcast %1 : vector<1x128xf32> to vector<32x128xf32>
    %20 = arith.addf %18, %19 : vector<32x128xf32>
    %cst_7 = arith.constant dense<0.000000e+00> : vector<128xf32>
    %21 = vector.multi_reduction <add>, %20, %cst_7 [0] : vector<32x128xf32> to vector<128xf32>
    %22 = vector.shape_cast %21 : vector<128xf32> to vector<1x128xf32>
    %23 = arith.mulf %20, %20 : vector<32x128xf32>
    %cst_8 = arith.constant dense<0.000000e+00> : vector<128xf32>
    %24 = vector.multi_reduction <add>, %23, %cst_8 [0] : vector<32x128xf32> to vector<128xf32>
    %25 = vector.shape_cast %24 : vector<128xf32> to vector<1x128xf32>
    %26 = tpu.concatenate %22, %25 in 0 : vector<1x128xf32>, vector<1x128xf32> -> vector<2x128xf32>
    %c0_9 = arith.constant 0 : index
    %c0_10 = arith.constant 0 : index
    %27 = vector.load %arg7[%c0_9, %c0_10] : memref<128x128xf32, #tpu.memory_space<vmem>>, vector<128x128xf32>
    %cst_11 = arith.constant dense<0.000000e+00> : vector<2x128xf32>
    %28 = tpu.matmul %26, %27, %cst_11 {dimension_numbers = #tpu.dot_dimension_numbers<[1], [0], [0], [1], [0, 0, 1, 1], [], []>} : vector<2x128xf32>, vector<128x128xf32>, vector<2x128xf32> -> vector<2x128xf32>
    %29 = vector.extract_strided_slice %28 {offsets = [0, 0], sizes = [1, 128], strides = [1, 1]} : vector<2x128xf32> to vector<1x128xf32>
    %30 = vector.extract_strided_slice %28 {offsets = [1, 0], sizes = [1, 128], strides = [1, 1]} : vector<2x128xf32> to vector<1x128xf32>
    %31 = arith.mulf %29, %29 : vector<1x128xf32>
    %32 = arith.subf %30, %31 : vector<1x128xf32>
    %cst_12 = arith.constant 9.99999974E-6 : f32
    %33 = vector.broadcast %cst_12 : f32 to vector<1x128xf32>
    %34 = arith.addf %32, %33 : vector<1x128xf32>
    %35 = math.rsqrt %34 : vector<1x128xf32>
    %36 = arith.mulf %35, %2 : vector<1x128xf32>
    %37 = arith.mulf %29, %36 : vector<1x128xf32>
    %38 = arith.subf %3, %37 : vector<1x128xf32>
    %39 = vector.broadcast %36 : vector<1x128xf32> to vector<32x128xf32>
    %40 = arith.mulf %20, %39 : vector<32x128xf32>
    %41 = vector.broadcast %38 : vector<1x128xf32> to vector<32x128xf32>
    %42 = arith.addf %40, %41 : vector<32x128xf32>
    %cst_13 = arith.constant 0.000000e+00 : f32
    %43 = vector.broadcast %cst_13 : f32 to vector<32x128xf32>
    %44 = arith.maximumf %42, %43 : vector<32x128xf32>
    %c1_i32_14 = arith.constant 1 : i32
    %45 = tpu.dynamic_rotate %44 by %c1_i32_14 dim 0 : vector<32x128xf32>, i32 -> vector<32x128xf32>
    %46 = vector.extract_strided_slice %7 {offsets = [0, 0], sizes = [32, 128], strides = [1, 1]} : vector<32x256xf32> to vector<32x128xf32>
    %47 = arith.mulf %45, %46 : vector<32x128xf32>
    %c31_i32_15 = arith.constant 31 : i32
    %48 = tpu.dynamic_rotate %44 by %c31_i32_15 dim 0 : vector<32x128xf32>, i32 -> vector<32x128xf32>
    %49 = vector.extract_strided_slice %7 {offsets = [0, 128], sizes = [32, 128], strides = [1, 1]} : vector<32x256xf32> to vector<32x128xf32>
    %50 = arith.mulf %48, %49 : vector<32x128xf32>
    %51 = tpu.concatenate %47, %44, %50 in 1 : vector<32x128xf32>, vector<32x128xf32>, vector<32x128xf32> -> vector<32x384xf32>
    %52 = arith.truncf %51 : vector<32x384xf32> to vector<32x384xbf16>
    %c0_16 = arith.constant 0 : index
    %c0_17 = arith.constant 0 : index
    %53 = vector.load %arg3[%c0_16, %c0_17] : memref<384x256xbf16, #tpu.memory_space<vmem>>, vector<384x256xbf16>
    %cst_18 = arith.constant dense<0.000000e+00> : vector<32x256xf32>
    %54 = tpu.matmul %52, %53, %cst_18 {dimension_numbers = #tpu.dot_dimension_numbers<[1], [0], [0], [1], [0, 0, 1, 1], [], []>} : vector<32x384xbf16>, vector<384x256xbf16>, vector<32x256xf32> -> vector<32x256xf32>
    %55 = vector.broadcast %4 : vector<1x256xf32> to vector<32x256xf32>
    %56 = arith.addf %54, %55 : vector<32x256xf32>
    %cst_19 = arith.constant 0.000000e+00 : f32
    %57 = vector.broadcast %cst_19 : f32 to vector<32x256xf32>
    %58 = arith.maximumf %56, %57 : vector<32x256xf32>
    %59 = vector.shape_cast %58 : vector<32x256xf32> to vector<2x4096xf32>
    tpu.wait_dma2 semaphore(%arg11 : memref<!tpu.dma_semaphore, #tpu.memory_space<semaphore_mem>>) src(%arg4 : memref<4096x64xbf16, #tpu.memory_space<any>>) dst(%arg10 : memref<4096x64xbf16, #tpu.memory_space<vmem>>)
    %60 = arith.truncf %59 : vector<2x4096xf32> to vector<2x4096xbf16>
    %c0_20 = arith.constant 0 : index
    %c0_21 = arith.constant 0 : index
    %61 = vector.load %arg10[%c0_20, %c0_21] : memref<4096x64xbf16, #tpu.memory_space<vmem>>, vector<4096x64xbf16>
    %cst_22 = arith.constant dense<0.000000e+00> : vector<2x64xf32>
    %62 = tpu.matmul %60, %61, %cst_22 {dimension_numbers = #tpu.dot_dimension_numbers<[1], [0], [0], [1], [0, 0, 1, 1], [], []>} : vector<2x4096xbf16>, vector<4096x64xbf16>, vector<2x64xf32> -> vector<2x64xf32>
    %63 = vector.broadcast %5 : vector<1x64xf32> to vector<2x64xf32>
    %64 = arith.addf %62, %63 : vector<2x64xf32>
    %65 = vector.extract_strided_slice %64 {offsets = [0, 0], sizes = [2, 32], strides = [1, 1]} : vector<2x64xf32> to vector<2x32xf32>
    %66 = vector.extract_strided_slice %64 {offsets = [0, 32], sizes = [2, 32], strides = [1, 1]} : vector<2x64xf32> to vector<2x32xf32>
    %cst_23 = arith.constant 5.000000e-01 : f32
    %67 = vector.broadcast %cst_23 : f32 to vector<2x32xf32>
    %68 = arith.mulf %67, %66 : vector<2x32xf32>
    %69 = math.exp %68 : vector<2x32xf32>
    %c0_24 = arith.constant 0 : index
    %c0_25 = arith.constant 0 : index
    %70 = vector.load %arg1[%c0_24, %c0_25] : memref<2x32xf32, #tpu.memory_space<vmem>>, vector<2x32xf32>
    %71 = arith.mulf %69, %70 : vector<2x32xf32>
    %72 = arith.addf %65, %71 : vector<2x32xf32>
    %c0_26 = arith.constant 0 : index
    %c0_27 = arith.constant 0 : index
    %73 = vector.load %arg5[%c0_26, %c0_27] : memref<32x128xf32, #tpu.memory_space<vmem>>, vector<32x128xf32>
    %cst_28 = arith.constant dense<0.000000e+00> : vector<2x128xf32>
    %74 = tpu.matmul %72, %73, %cst_28 {dimension_numbers = #tpu.dot_dimension_numbers<[1], [0], [0], [1], [0, 0, 1, 1], [], []>} : vector<2x32xf32>, vector<32x128xf32>, vector<2x128xf32> -> vector<2x128xf32>
    %75 = vector.broadcast %6 : vector<1x128xf32> to vector<2x128xf32>
    %76 = arith.addf %74, %75 : vector<2x128xf32>
    %c0_29 = arith.constant 0 : index
    %c0_30 = arith.constant 0 : index
    %77 = vector.load %arg9[%c0_29, %c0_30] : memref<2x128xf32, #tpu.memory_space<vmem>>, vector<2x128xf32>
    tpu.vector_store %arg9[%c0_29, %c0_30], %76 {strides = array<i32>} : memref<2x128xf32, #tpu.memory_space<vmem>>, vector<2x128xf32>,
    return
  }
}

</mosaic_0001>

<bundles_post_ra>
// kernel: surprisenet_vae_forward.1
= control target key start
LH: loop header
LB: loop body
LE: loop exit
PB: predicated region body
PF: predicated region fallthrough
CT: control target
= control target key end

     0   :  { %14 = vsyncpa [#allocation5], 0  ;;  %s7052_s0 = inlined_call_operand.vmem [shape: f32[32,64], index: 0, kind: input, shape index: {}]   ;;  %s7053_s1 = inlined_call_operand.vmem [shape: f32[2,32], index: 1, kind: input, shape index: {}]   ;;  %s7054_s2 = inlined_call_operand.vmem [shape: bf16[192,128], index: 2, kind: input, shape index: {}]   ;;  %s7055_s3 = inlined_call_operand.vmem [shape: bf16[384,256], index: 3, kind: input, shape index: {}]   ;;  %s7056_s4 = inlined_call_operand.vmem [shape: bf16[4096,64], index: 4, kind: input, shape index: {}]   ;;  %s7057_s5 = inlined_call_operand.vmem [shape: f32[32,128], index: 5, kind: input, shape index: {}]   ;;  %s7058_s6 = inlined_call_operand.vmem [shape: f32[8,256], index: 6, kind: input, shape index: {}]   ;;  %s7059_s7 = inlined_call_operand.vmem [shape: f32[128,128], index: 7, kind: input, shape index: {}]   ;;  %s7060_s8 = inlined_call_operand.vmem [shape: f32[32,256], index: 8, kind: input, shape index: {}]   ;;  %s7061_s9 = inlined_call_operand.hbm [shape: f32[2,128], index: 9, kind: output, shape index: {}]  }
   0x1   :  { %v65_v0 = vld [vmem:[%s7056_s4] sm:$0xff]  ;;  %v67_v1 = vld [vmem:[%s7056_s4 + $0x8] sm:$0xff]  ;;  %v69_v2 = vld [vmem:[%s7056_s4 + $0x10] sm:$0xff] }
   0x2   :  { %66 = vst [vmem:[#allocation2] sm:$0xff] %v65_v0  ;;  %68 = vst [vmem:[#allocation2 + $0x8] sm:$0xff] %v67_v1  ;;  %v71_v3 = vld [vmem:[%s7056_s4 + $0x18] sm:$0xff]  ;;  %v73_v4 = vld [vmem:[%s7056_s4 + $0x20] sm:$0xff] }
   0x3   :  { %70 = vst [vmem:[#allocation2 + $0x10] sm:$0xff] %v69_v2  ;;  %72 = vst [vmem:[#allocation2 + $0x18] sm:$0xff] %v71_v3  ;;  %v75_v5 = vld [vmem:[%s7056_s4 + $0x28] sm:$0xff]  ;;  %v77_v6 = vld [vmem:[%s7056_s4 + $0x30] sm:$0xff] }
   0x4   :  { %74 = vst [vmem:[#allocation2 + $0x20] sm:$0xff] %v73_v4  ;;  %v79_v7 = vld [vmem:[%s7056_s4 + $0x38] sm:$0xff]  ;;  %76 = vst [vmem:[#allocation2 + $0x28] sm:$0xff] %v75_v5  ;;  %v81_v8 = vld [vmem:[%s7056_s4 + $0x40] sm:$0xff] }
   0x5   :  { %78 = vst [vmem:[#allocation2 + $0x30] sm:$0xff] %v77_v6  ;;  %80 = vst [vmem:[#allocation2 + $0x38] sm:$0xff] %v79_v7  ;;  %v83_v9 = vld [vmem:[%s7056_s4 + $0x48] sm:$0xff]  ;;  %v85_v10 = vld [vmem:[%s7056_s4 + $0x50] sm:$0xff] }
   0x6   :  { %82 = vst [vmem:[#allocation2 + $0x40] sm:$0xff] %v81_v8  ;;  %84 = vst [vmem:[#allocation2 + $0x48] sm:$0xff] %v83_v9  ;;  %v87_v11 = vld [vmem:[%s7056_s4 + $0x58] sm:$0xff]  ;;  %v89_v12 = vld [vmem:[%s7056_s4 + $0x60] sm:$0xff] }
   0x7   :  { %86 = vst [vmem:[#allocation2 + $0x50] sm:$0xff] %v85_v10  ;;  %v91_v13 = vld [vmem:[%s7056_s4 + $0x68] sm:$0xff]  ;;  %88 = vst [vmem:[#allocation2 + $0x58] sm:$0xff] %v87_v11  ;;  %v93_v14 = vld [vmem:[%s7056_s4 + $0x70] sm:$0xff] }
   0x8   :  { %90 = vst [vmem:[#allocation2 + $0x60] sm:$0xff] %v89_v12  ;;  %92 = vst [vmem:[#allocation2 + $0x68] sm:$0xff] %v91_v13  ;;  %v95_v15 = vld [vmem:[%s7056_s4 + $0x78] sm:$0xff]  ;;  %v97_v16 = vld [vmem:[%s7056_s4 + $0x80] sm:$0xff] }
   0x9   :  { %94 = vst [vmem:[#allocation2 + $0x70] sm:$0xff] %v93_v14  ;;  %96 = vst [vmem:[#allocation2 + $0x78] sm:$0xff] %v95_v15  ;;  %v99_v17 = vld [vmem:[%s7056_s4 + $0x88] sm:$0xff]  ;;  %v101_v18 = vld [vmem:[%s7056_s4 + $0x90] sm:$0xff] }
   0xa   :  { %98 = vst [vmem:[#allocation2 + $0x80] sm:$0xff] %v97_v16  ;;  %v103_v19 = vld [vmem:[%s7056_s4 + $0x98] sm:$0xff]  ;;  %100 = vst [vmem:[#allocation2 + $0x88] sm:$0xff] %v99_v17  ;;  %v105_v20 = vld [vmem:[%s7056_s4 + $0xa0] sm:$0xff] }
   0xb   :  { %102 = vst [vmem:[#allocation2 + $0x90] sm:$0xff] %v101_v18  ;;  %104 = vst [vmem:[#allocation2 + $0x98] sm:$0xff] %v103_v19  ;;  %v107_v21 = vld [vmem:[%s7056_s4 + $0xa8] sm:$0xff]  ;;  %v109_v22 = vld [vmem:[%s7056_s4 + $0xb0] sm:$0xff] }
   0xc   :  { %106 = vst [vmem:[#allocation2 + $0xa0] sm:$0xff] %v105_v20  ;;  %108 = vst [vmem:[#allocation2 + $0xa8] sm:$0xff] %v107_v21  ;;  %v111_v23 = vld [vmem:[%s7056_s4 + $0xb8] sm:$0xff]  ;;  %v113_v24 = vld [vmem:[%s7056_s4 + $0xc0] sm:$0xff] }
   0xd   :  { %110 = vst [vmem:[#allocation2 + $0xb0] sm:$0xff] %v109_v22  ;;  %v115_v25 = vld [vmem:[%s7056_s4 + $0xc8] sm:$0xff]  ;;  %112 = vst [vmem:[#allocation2 + $0xb8] sm:$0xff] %v111_v23  ;;  %v117_v26 = vld [vmem:[%s7056_s4 + $0xd0] sm:$0xff] }
   0xe   :  { %114 = vst [vmem:[#allocation2 + $0xc0] sm:$0xff] %v113_v24  ;;  %116 = vst [vmem:[#allocation2 + $0xc8] sm:$0xff] %v115_v25  ;;  %v119_v27 = vld [vmem:[%s7056_s4 + $0xd8] sm:$0xff]  ;;  %v121_v28 = vld [vmem:[%s7056_s4 + $0xe0] sm:$0xff] }
   0xf   :  { %118 = vst [vmem:[#allocation2 + $0xd0] sm:$0xff] %v117_v26  ;;  %120 = vst [vmem:[#allocation2 + $0xd8] sm:$0xff] %v119_v27  ;;  %v123_v29 = vld [vmem:[%s7056_s4 + $0xe8] sm:$0xff]  ;;  %v125_v30 = vld [vmem:[%s7056_s4 + $0xf0] sm:$0xff] }
  0x10   :  { %122 = vst [vmem:[#allocation2 + $0xe0] sm:$0xff] %v121_v28  ;;  %v127_v31 = vld [vmem:[%s7056_s4 + $0xf8] sm:$0xff]  ;;  %124 = vst [vmem:[#allocation2 + $0xe8] sm:$0xff] %v123_v29  ;;  %v129_v32 = vld [vmem:[%s7056_s4 + $0x100] sm:$0xff] }
  0x11   :  { %126 = vst [vmem:[#allocation2 + $0xf0] sm:$0xff] %v125_v30  ;;  %128 = vst [vmem:[#allocation2 + $0xf8] sm:$0xff] %v127_v31  ;;  %v131_v33 = vld [vmem:[%s7056_s4 + $0x108] sm:$0xff]  ;;  %v133_v34 = vld [vmem:[%s7056_s4 + $0x110] sm:$0xff] }
  0x12   :  { %130 = vst [vmem:[#allocation2 + $0x100] sm:$0xff] %v129_v32  ;;  %132 = vst [vmem:[#allocation2 + $0x108] sm:$0xff] %v131_v33  ;;  %v135_v35 = vld [vmem:[%s7056_s4 + $0x118] sm:$0xff]  ;;  %v137_v36 = vld [vmem:[%s7056_s4 + $0x120] sm:$0xff] }
  0x13   :  { %134 = vst [vmem:[#allocation2 + $0x110] sm:$0xff] %v133_v34  ;;  %v139_v37 = vld [vmem:[%s7056_s4 + $0x128] sm:$0xff]  ;;  %136 = vst [vmem:[#allocation2 + $0x118] sm:$0xff] %v135_v35  ;;  %v141_v38 = vld [vmem:[%s7056_s4 + $0x130] sm:$0xff] }
  0x14   :  { %138 = vst [vmem:[#allocation2 + $0x120] sm:$0xff] %v137_v36  ;;  %140 = vst [vmem:[#allocation2 + $0x128] sm:$0xff] %v139_v37  ;;  %v143_v39 = vld [vmem:[%s7056_s4 + $0x138] sm:$0xff]  ;;  %v145_v40 = vld [vmem:[%s7056_s4 + $0x140] sm:$0xff] }
  0x15   :  { %142 = vst [vmem:[#allocation2 + $0x130] sm:$0xff] %v141_v38  ;;  %144 = vst [vmem:[#allocation2 + $0x138] sm:$0xff] %v143_v39  ;;  %v147_v41 = vld [vmem:[%s7056_s4 + $0x148] sm:$0xff]  ;;  %v149_v42 = vld [vmem:[%s7056_s4 + $0x150] sm:$0xff] }
  0x16   :  { %146 = vst [vmem:[#allocation2 + $0x140] sm:$0xff] %v145_v40  ;;  %v151_v43 = vld [vmem:[%s7056_s4 + $0x158] sm:$0xff]  ;;  %148 = vst [vmem:[#allocation2 + $0x148] sm:$0xff] %v147_v41  ;;  %v153_v44 = vld [vmem:[%s7056_s4 + $0x160] sm:$0xff] }
  0x17   :  { %150 = vst [vmem:[#allocation2 + $0x150] sm:$0xff] %v149_v42  ;;  %152 = vst [vmem:[#allocation2 + $0x158] sm:$0xff] %v151_v43  ;;  %v155_v45 = vld [vmem:[%s7056_s4 + $0x168] sm:$0xff]  ;;  %v157_v46 = vld [vmem:[%s7056_s4 + $0x170] sm:$0xff] }
  0x18   :  { %154 = vst [vmem:[#allocation2 + $0x160] sm:$0xff] %v153_v44  ;;  %156 = vst [vmem:[#allocation2 + $0x168] sm:$0xff] %v155_v45  ;;  %v159_v47 = vld [vmem:[%s7056_s4 + $0x178] sm:$0xff]  ;;  %v161_v48 = vld [vmem:[%s7056_s4 + $0x180] sm:$0xff] }
  0x19   :  { %158 = vst [vmem:[#allocation2 + $0x170] sm:$0xff] %v157_v46  ;;  %v163_v49 = vld [vmem:[%s7056_s4 + $0x188] sm:$0xff]  ;;  %160 = vst [vmem:[#allocation2 + $0x178] sm:$0xff] %v159_v47  ;;  %v165_v50 = vld [vmem:[%s7056_s4 + $0x190] sm:$0xff] }
  0x1a   :  { %162 = vst [vmem:[#allocation2 + $0x180] sm:$0xff] %v161_v48  ;;  %164 = vst [vmem:[#allocation2 + $0x188] sm:$0xff] %v163_v49  ;;  %v167_v51 = vld [vmem:[%s7056_s4 + $0x198] sm:$0xff]  ;;  %v169_v52 = vld [vmem:[%s7056_s4 + $0x1a0] sm:$0xff] }
  0x1b   :  { %166 = vst [vmem:[#allocation2 + $0x190] sm:$0xff] %v165_v50  ;;  %168 = vst [vmem:[#allocation2 + $0x198] sm:$0xff] %v167_v51  ;;  %v171_v53 = vld [vmem:[%s7056_s4 + $0x1a8] sm:$0xff]  ;;  %v173_v54 = vld [vmem:[%s7056_s4 + $0x1b0] sm:$0xff] }
  0x1c   :  { %170 = vst [vmem:[#allocation2 + $0x1a0] sm:$0xff] %v169_v52  ;;  %v175_v55 = vld [vmem:[%s7056_s4 + $0x1b8] sm:$0xff]  ;;  %172 = vst [vmem:[#allocation2 + $0x1a8] sm:$0xff] %v171_v53  ;;  %v177_v56 = vld [vmem:[%s7056_s4 + $0x1c0] sm:$0xff] }
  0x1d   :  { %174 = vst [vmem:[#allocation2 + $0x1b0] sm:$0xff] %v173_v54  ;;  %176 = vst [vmem:[#allocation2 + $0x1b8] sm:$0xff] %v175_v55  ;;  %v179_v57 = vld [vmem:[%s7056_s4 + $0x1c8] sm:$0xff]  ;;  %v181_v58 = vld [vmem:[%s7056_s4 + $0x1d0] sm:$0xff] }
  0x1e   :  { %178 = vst [vmem:[#allocation2 + $0x1c0] sm:$0xff] %v177_v56  ;;  %180 = vst [vmem:[#allocation2 + $0x1c8] sm:$0xff] %v179_v57  ;;  %v183_v59 = vld [vmem:[%s7056_s4 + $0x1d8] sm:$0xff]  ;;  %v185_v60 = vld [vmem:[%s7056_s4 + $0x1e0] sm:$0xff] }
  0x1f   :  { %182 = vst [vmem:[#allocation2 + $0x1d0] sm:$0xff] %v181_v58  ;;  %v187_v61 = vld [vmem:[%s7056_s4 + $0x1e8] sm:$0xff]  ;;  %184 = vst [vmem:[#allocation2 + $0x1d8] sm:$0xff] %v183_v59  ;;  %v189_v62 = vld [vmem:[%s7056_s4 + $0x1f0] sm:$0xff] }
  0x20   :  { %186 = vst [vmem:[#allocation2 + $0x1e0] sm:$0xff] %v185_v60  ;;  %188 = vst [vmem:[#allocation2 + $0x1e8] sm:$0xff] %v187_v61  ;;  %v191_v63 = vld [vmem:[%s7056_s4 + $0x1f8] sm:$0xff]  ;;  %v193_v0 = vld [vmem:[%s7056_s4 + $0x200] sm:$0xff] }
  0x21   :  { %190 = vst [vmem:[#allocation2 + $0x1f0] sm:$0xff] %v189_v62  ;;  %192 = vst [vmem:[#allocation2 + $0x1f8] sm:$0xff] %v191_v63  ;;  %v195_v1 = vld [vmem:[%s7056_s4 + $0x208] sm:$0xff]  ;;  %v197_v2 = vld [vmem:[%s7056_s4 + $0x210] sm:$0xff] }
  0x22   :  { %194 = vst [vmem:[#allocation2 + $0x200] sm:$0xff] %v193_v0  ;;  %v199_v3 = vld [vmem:[%s7056_s4 + $0x218] sm:$0xff]  ;;  %196 = vst [vmem:[#allocation2 + $0x208] sm:$0xff] %v195_v1  ;;  %v201_v4 = vld [vmem:[%s7056_s4 + $0x220] sm:$0xff] }
  0x23   :  { %198 = vst [vmem:[#allocation2 + $0x210] sm:$0xff] %v197_v2  ;;  %200 = vst [vmem:[#allocation2 + $0x218] sm:$0xff] %v199_v3  ;;  %v203_v5 = vld [vmem:[%s7056_s4 + $0x228] sm:$0xff]  ;;  %v205_v6 = vld [vmem:[%s7056_s4 + $0x230] sm:$0xff] }
  0x24   :  { %202 = vst [vmem:[#allocation2 + $0x220] sm:$0xff] %v201_v4  ;;  %204 = vst [vmem:[#allocation2 + $0x228] sm:$0xff] %v203_v5  ;;  %v207_v7 = vld [vmem:[%s7056_s4 + $0x238] sm:$0xff]  ;;  %v209_v8 = vld [vmem:[%s7056_s4 + $0x240] sm:$0xff] }
  0x25   :  { %206 = vst [vmem:[#allocation2 + $0x230] sm:$0xff] %v205_v6  ;;  %v211_v9 = vld [vmem:[%s7056_s4 + $0x248] sm:$0xff]  ;;  %208 = vst [vmem:[#allocation2 + $0x238] sm:$0xff] %v207_v7  ;;  %v213_v10 = vld [vmem:[%s7056_s4 + $0x250] sm:$0xff] }
  0x26   :  { %210 = vst [vmem:[#allocation2 + $0x240] sm:$0xff] %v209_v8  ;;  %212 = vst [vmem:[#allocation2 + $0x248] sm:$0xff] %v211_v9  ;;  %v215_v11 = vld [vmem:[%s7056_s4 + $0x258] sm:$0xff]  ;;  %v217_v12 = vld [vmem:[%s7056_s4 + $0x260] sm:$0xff] }
  0x27   :  { %214 = vst [vmem:[#allocation2 + $0x250] sm:$0xff] %v213_v10  ;;  %216 = vst [vmem:[#allocation2 + $0x258] sm:$0xff] %v215_v11  ;;  %v219_v13 = vld [vmem:[%s7056_s4 + $0x268] sm:$0xff]  ;;  %v221_v14 = vld [vmem:[%s7056_s4 + $0x270] sm:$0xff] }
  0x28   :  { %218 = vst [vmem:[#allocation2 + $0x260] sm:$0xff] %v217_v12  ;;  %v223_v15 = vld [vmem:[%s7056_s4 + $0x278] sm:$0xff]  ;;  %220 = vst [vmem:[#allocation2 + $0x268] sm:$0xff] %v219_v13  ;;  %v225_v16 = vld [vmem:[%s7056_s4 + $0x280] sm:$0xff] }
  0x29   :  { %222 = vst [vmem:[#allocation2 + $0x270] sm:$0xff] %v221_v14  ;;  %224 = vst [vmem:[#allocation2 + $0x278] sm:$0xff] %v223_v15  ;;  %v227_v17 = vld [vmem:[%s7056_s4 + $0x288] sm:$0xff]  ;;  %v229_v18 = vld [vmem:[%s7056_s4 + $0x290] sm:$0xff] }
  0x2a   :  { %226 = vst [vmem:[#allocation2 + $0x280] sm:$0xff] %v225_v16  ;;  %228 = vst [vmem:[#allocation2 + $0x288] sm:$0xff] %v227_v17  ;;  %v231_v19 = vld [vmem:[%s7056_s4 + $0x298] sm:$0xff]  ;;  %v233_v20 = vld [vmem:[%s7056_s4 + $0x2a0] sm:$0xff] }
  0x2b   :  { %230 = vst [vmem:[#allocation2 + $0x290] sm:$0xff] %v229_v18  ;;  %v235_v21 = vld [vmem:[%s7056_s4 + $0x2a8] sm:$0xff]  ;;  %232 = vst [vmem:[#allocation2 + $0x298] sm:$0xff] %v231_v19  ;;  %v237_v22 = vld [vmem:[%s7056_s4 + $0x2b0] sm:$0xff] }
  0x2c   :  { %234 = vst [vmem:[#allocation2 + $0x2a0] sm:$0xff] %v233_v20  ;;  %236 = vst [vmem:[#allocation2 + $0x2a8] sm:$0xff] %v235_v21  ;;  %v239_v23 = vld [vmem:[%s7056_s4 + $0x2b8] sm:$0xff]  ;;  %v241_v24 = vld [vmem:[%s7056_s4 + $0x2c0] sm:$0xff] }
  0x2d   :  { %238 = vst [vmem:[#allocation2 + $0x2b0] sm:$0xff] %v237_v22  ;;  %240 = vst [vmem:[#allocation2 + $0x2b8] sm:$0xff] %v239_v23  ;;  %v243_v25 = vld [vmem:[%s7056_s4 + $0x2c8] sm:$0xff]  ;;  %v245_v26 = vld [vmem:[%s7056_s4 + $0x2d0] sm:$0xff] }
  0x2e   :  { %242 = vst [vmem:[#allocation2 + $0x2c0] sm:$0xff] %v241_v24  ;;  %v247_v27 = vld [vmem:[%s7056_s4 + $0x2d8] sm:$0xff]  ;;  %244 = vst [vmem:[#allocation2 + $0x2c8] sm:$0xff] %v243_v25  ;;  %v249_v28 = vld [vmem:[%s7056_s4 + $0x2e0] sm:$0xff] }
  0x2f   :  { %246 = vst [vmem:[#allocation2 + $0x2d0] sm:$0xff] %v245_v26  ;;  %248 = vst [vmem:[#allocation2 + $0x2d8] sm:$0xff] %v247_v27  ;;  %v251_v29 = vld [vmem:[%s7056_s4 + $0x2e8] sm:$0xff]  ;;  %v253_v30 = vld [vmem:[%s7056_s4 + $0x2f0] sm:$0xff] }
  0x30   :  { %250 = vst [vmem:[#allocation2 + $0x2e0] sm:$0xff] %v249_v28  ;;  %252 = vst [vmem:[#allocation2 + $0x2e8] sm:$0xff] %v251_v29  ;;  %v255_v31 = vld [vmem:[%s7056_s4 + $0x2f8] sm:$0xff]  ;;  %v257_v32 = vld [vmem:[%s7056_s4 + $0x300] sm:$0xff] }
  0x31   :  { %254 = vst [vmem:[#allocation2 + $0x2f0] sm:$0xff] %v253_v30  ;;  %v259_v33 = vld [vmem:[%s7056_s4 + $0x308] sm:$0xff]  ;;  %256 = vst [vmem:[#allocation2 + $0x2f8] sm:$0xff] %v255_v31  ;;  %v261_v34 = vld [vmem:[%s7056_s4 + $0x310] sm:$0xff] }
  0x32   :  { %258 = vst [vmem:[#allocation2 + $0x300] sm:$0xff] %v257_v32  ;;  %260 = vst [vmem:[#allocation2 + $0x308] sm:$0xff] %v259_v33  ;;  %v263_v35 = vld [vmem:[%s7056_s4 + $0x318] sm:$0xff]  ;;  %v265_v36 = vld [vmem:[%s7056_s4 + $0x320] sm:$0xff] }
  0x33   :  { %262 = vst [vmem:[#allocation2 + $0x310] sm:$0xff] %v261_v34  ;;  %264 = vst [vmem:[#allocation2 + $0x318] sm:$0xff] %v263_v35  ;;  %v267_v37 = vld [vmem:[%s7056_s4 + $0x328] sm:$0xff]  ;;  %v269_v38 = vld [vmem:[%s7056_s4 + $0x330] sm:$0xff] }
  0x34   :  { %266 = vst [vmem:[#allocation2 + $0x320] sm:$0xff] %v265_v36  ;;  %v271_v39 = vld [vmem:[%s7056_s4 + $0x338] sm:$0xff]  ;;  %268 = vst [vmem:[#allocation2 + $0x328] sm:$0xff] %v267_v37  ;;  %v273_v40 = vld [vmem:[%s7056_s4 + $0x340] sm:$0xff] }
  0x35   :  { %270 = vst [vmem:[#allocation2 + $0x330] sm:$0xff] %v269_v38  ;;  %272 = vst [vmem:[#allocation2 + $0x338] sm:$0xff] %v271_v39  ;;  %v275_v41 = vld [vmem:[%s7056_s4 + $0x348] sm:$0xff]  ;;  %v277_v42 = vld [vmem:[%s7056_s4 + $0x350] sm:$0xff] }
  0x36   :  { %274 = vst [vmem:[#allocation2 + $0x340] sm:$0xff] %v273_v40  ;;  %276 = vst [vmem:[#allocation2 + $0x348] sm:$0xff] %v275_v41  ;;  %v279_v43 = vld [vmem:[%s7056_s4 + $0x358] sm:$0xff]  ;;  %v281_v44 = vld [vmem:[%s7056_s4 + $0x360] sm:$0xff] }
  0x37   :  { %278 = vst [vmem:[#allocation2 + $0x350] sm:$0xff] %v277_v42  ;;  %v283_v45 = vld [vmem:[%s7056_s4 + $0x368] sm:$0xff]  ;;  %280 = vst [vmem:[#allocation2 + $0x358] sm:$0xff] %v279_v43  ;;  %v285_v46 = vld [vmem:[%s7056_s4 + $0x370] sm:$0xff] }
  0x38   :  { %282 = vst [vmem:[#allocation2 + $0x360] sm:$0xff] %v281_v44  ;;  %284 = vst [vmem:[#allocation2 + $0x368] sm:$0xff] %v283_v45  ;;  %v287_v47 = vld [vmem:[%s7056_s4 + $0x378] sm:$0xff]  ;;  %v289_v48 = vld [vmem:[%s7056_s4 + $0x380] sm:$0xff] }
  0x39   :  { %286 = vst [vmem:[#allocation2 + $0x370] sm:$0xff] %v285_v46  ;;  %288 = vst [vmem:[#allocation2 + $0x378] sm:$0xff] %v287_v47  ;;  %v291_v49 = vld [vmem:[%s7056_s4 + $0x388] sm:$0xff]  ;;  %v293_v50 = vld [vmem:[%s7056_s4 + $0x390] sm:$0xff] }
  0x3a   :  { %290 = vst [vmem:[#allocation2 + $0x380] sm:$0xff] %v289_v48  ;;  %v295_v51 = vld [vmem:[%s7056_s4 + $0x398] sm:$0xff]  ;;  %292 = vst [vmem:[#allocation2 + $0x388] sm:$0xff] %v291_v49  ;;  %v297_v52 = vld [vmem:[%s7056_s4 + $0x3a0] sm:$0xff] }
  0x3b   :  { %294 = vst [vmem:[#allocation2 + $0x390] sm:$0xff] %v293_v50  ;;  %296 = vst [vmem:[#allocation2 + $0x398] sm:$0xff] %v295_v51  ;;  %v299_v53 = vld [vmem:[%s7056_s4 + $0x3a8] sm:$0xff]  ;;  %v301_v54 = vld [vmem:[%s7056_s4 + $0x3b0] sm:$0xff] }
  0x3c   :  { %298 = vst [vmem:[#allocation2 + $0x3a0] sm:$0xff] %v297_v52  ;;  %300 = vst [vmem:[#allocation2 + $0x3a8] sm:$0xff] %v299_v53  ;;  %v303_v55 = vld [vmem:[%s7056_s4 + $0x3b8] sm:$0xff]  ;;  %v305_v56 = vld [vmem:[%s7056_s4 + $0x3c0] sm:$0xff] }
  0x3d   :  { %302 = vst [vmem:[#allocation2 + $0x3b0] sm:$0xff] %v301_v54  ;;  %v307_v57 = vld [vmem:[%s7056_s4 + $0x3c8] sm:$0xff]  ;;  %304 = vst [vmem:[#allocation2 + $0x3b8] sm:$0xff] %v303_v55  ;;  %v309_v58 = vld [vmem:[%s7056_s4 + $0x3d0] sm:$0xff] }
  0x3e   :  { %306 = vst [vmem:[#allocation2 + $0x3c0] sm:$0xff] %v305_v56  ;;  %308 = vst [vmem:[#allocation2 + $0x3c8] sm:$0xff] %v307_v57  ;;  %v311_v59 = vld [vmem:[%s7056_s4 + $0x3d8] sm:$0xff]  ;;  %v313_v60 = vld [vmem:[%s7056_s4 + $0x3e0] sm:$0xff] }
  0x3f   :  { %310 = vst [vmem:[#allocation2 + $0x3d0] sm:$0xff] %v309_v58  ;;  %312 = vst [vmem:[#allocation2 + $0x3d8] sm:$0xff] %v311_v59  ;;  %v315_v61 = vld [vmem:[%s7056_s4 + $0x3e8] sm:$0xff]  ;;  %v317_v62 = vld [vmem:[%s7056_s4 + $0x3f0] sm:$0xff] }
  0x40   :  { %314 = vst [vmem:[#allocation2 + $0x3e0] sm:$0xff] %v313_v60  ;;  %v319_v63 = vld [vmem:[%s7056_s4 + $0x3f8] sm:$0xff]  ;;  %316 = vst [vmem:[#allocation2 + $0x3e8] sm:$0xff] %v315_v61  ;;  %v321_v0 = vld [vmem:[%s7056_s4 + $0x400] sm:$0xff] }
  0x41   :  { %318 = vst [vmem:[#allocation2 + $0x3f0] sm:$0xff] %v317_v62  ;;  %320 = vst [vmem:[#allocation2 + $0x3f8] sm:$0xff] %v319_v63  ;;  %v323_v1 = vld [vmem:[%s7056_s4 + $0x408] sm:$0xff]  ;;  %v325_v2 = vld [vmem:[%s7056_s4 + $0x410] sm:$0xff] }
  0x42   :  { %322 = vst [vmem:[#allocation2 + $0x400] sm:$0xff] %v321_v0  ;;  %324 = vst [vmem:[#allocation2 + $0x408] sm:$0xff] %v323_v1  ;;  %v327_v3 = vld [vmem:[%s7056_s4 + $0x418] sm:$0xff]  ;;  %v329_v4 = vld [vmem:[%s7056_s4 + $0x420] sm:$0xff] }
  0x43   :  { %326 = vst [vmem:[#allocation2 + $0x410] sm:$0xff] %v325_v2  ;;  %v331_v5 = vld [vmem:[%s7056_s4 + $0x428] sm:$0xff]  ;;  %328 = vst [vmem:[#allocation2 + $0x418] sm:$0xff] %v327_v3  ;;  %v333_v6 = vld [vmem:[%s7056_s4 + $0x430] sm:$0xff] }
  0x44   :  { %330 = vst [vmem:[#allocation2 + $0x420] sm:$0xff] %v329_v4  ;;  %332 = vst [vmem:[#allocation2 + $0x428] sm:$0xff] %v331_v5  ;;  %v335_v7 = vld [vmem:[%s7056_s4 + $0x438] sm:$0xff]  ;;  %v337_v8 = vld [vmem:[%s7056_s4 + $0x440] sm:$0xff] }
  0x45   :  { %334 = vst [vmem:[#allocation2 + $0x430] sm:$0xff] %v333_v6  ;;  %336 = vst [vmem:[#allocation2 + $0x438] sm:$0xff] %v335_v7  ;;  %v339_v9 = vld [vmem:[%s7056_s4 + $0x448] sm:$0xff]  ;;  %v341_v10 = vld [vmem:[%s7056_s4 + $0x450] sm:$0xff] }
  0x46   :  { %338 = vst [vmem:[#allocation2 + $0x440] sm:$0xff] %v337_v8  ;;  %v343_v11 = vld [vmem:[%s7056_s4 + $0x458] sm:$0xff]  ;;  %340 = vst [vmem:[#allocation2 + $0x448] sm:$0xff] %v339_v9  ;;  %v345_v12 = vld [vmem:[%s7056_s4 + $0x460] sm:$0xff] }
  0x47   :  { %342 = vst [vmem:[#allocation2 + $0x450] sm:$0xff] %v341_v10  ;;  %344 = vst [vmem:[#allocation2 + $0x458] sm:$0xff] %v343_v11  ;;  %v347_v13 = vld [vmem:[%s7056_s4 + $0x468] sm:$0xff]  ;;  %v349_v14 = vld [vmem:[%s7056_s4 + $0x470] sm:$0xff] }
  0x48   :  { %346 = vst [vmem:[#allocation2 + $0x460] sm:$0xff] %v345_v12  ;;  %348 = vst [vmem:[#allocation2 + $0x468] sm:$0xff] %v347_v13  ;;  %v351_v15 = vld [vmem:[%s7056_s4 + $0x478] sm:$0xff]  ;;  %v353_v16 = vld [vmem:[%s7056_s4 + $0x480] sm:$0xff] }
  0x49   :  { %350 = vst [vmem:[#allocation2 + $0x470] sm:$0xff] %v349_v14  ;;  %v355_v17 = vld [vmem:[%s7056_s4 + $0x488] sm:$0xff]  ;;  %352 = vst [vmem:[#allocation2 + $0x478] sm:$0xff] %v351_v15  ;;  %v357_v18 = vld [vmem:[%s7056_s4 + $0x490] sm:$0xff] }
  0x4a   :  { %354 = vst [vmem:[#allocation2 + $0x480] sm:$0xff] %v353_v16  ;;  %356 = vst [vmem:[#allocation2 + $0x488] sm:$0xff] %v355_v17  ;;  %v359_v19 = vld [vmem:[%s7056_s4 + $0x498] sm:$0xff]  ;;  %v361_v20 = vld [vmem:[%s7056_s4 + $0x4a0] sm:$0xff] }
  0x4b   :  { %358 = vst [vmem:[#allocation2 + $0x490] sm:$0xff] %v357_v18  ;;  %360 = vst [vmem:[#allocation2 + $0x498] sm:$0xff] %v359_v19  ;;  %v363_v21 = vld [vmem:[%s7056_s4 + $0x4a8] sm:$0xff]  ;;  %v365_v22 = vld [vmem:[%s7056_s4 + $0x4b0] sm:$0xff] }
  0x4c   :  { %362 = vst [vmem:[#allocation2 + $0x4a0] sm:$0xff] %v361_v20  ;;  %v367_v23 = vld [vmem:[%s7056_s4 + $0x4b8] sm:$0xff]  ;;  %364 = vst [vmem:[#allocation2 + $0x4a8] sm:$0xff] %v363_v21  ;;  %v369_v24 = vld [vmem:[%s7056_s4 + $0x4c0] sm:$0xff] }
  0x4d   :  { %366 = vst [vmem:[#allocation2 + $0x4b0] sm:$0xff] %v365_v22  ;;  %368 = vst [vmem:[#allocation2 + $0x4b8] sm:$0xff] %v367_v23  ;;  %v371_v25 = vld [vmem:[%s7056_s4 + $0x4c8] sm:$0xff]  ;;  %v373_v26 = vld [vmem:[%s7056_s4 + $0x4d0] sm:$0xff] }
  0x4e   :  { %370 = vst [vmem:[#allocation2 + $0x4c0] sm:$0xff] %v369_v24  ;;  %372 = vst [vmem:[#allocation2 + $0x4c8] sm:$0xff] %v371_v25  ;;  %v375_v27 = vld [vmem:[%s7056_s4 + $0x4d8] sm:$0xff]  ;;  %v377_v28 = vld [vmem:[%s7056_s4 + $0x4e0] sm:$0xff] }
  0x4f   :  { %374 = vst [vmem:[#allocation2 + $0x4d0] sm:$0xff] %v373_v26  ;;  %v379_v29 = vld [vmem:[%s7056_s4 + $0x4e8] sm:$0xff]  ;;  %376 = vst [vmem:[#allocation2 + $0x4d8] sm:$0xff] %v375_v27  ;;  %v381_v30 = vld [vmem:[%s7056_s4 + $0x4f0] sm:$0xff] }
  0x50   :  { %378 = vst [vmem:[#allocation2 + $0x4e0] sm:$0xff] %v377_v28  ;;  %380 = vst [vmem:[#allocation2 + $0x4e8] sm:$0xff] %v379_v29  ;;  %v383_v31 = vld [vmem:[%s7056_s4 + $0x4f8] sm:$0xff]  ;;  %v385_v32 = vld [vmem:[%s7056_s4 + $0x500] sm:$0xff] }
  0x51   :  { %382 = vst [vmem:[#allocation2 + $0x4f0] sm:$0xff] %v381_v30  ;;  %384 = vst [vmem:[#allocation2 + $0x4f8] sm:$0xff] %v383_v31  ;;  %v387_v33 = vld [vmem:[%s7056_s4 + $0x508] sm:$0xff]  ;;  %v389_v34 = vld [vmem:[%s7056_s4 + $0x510] sm:$0xff] }
  0x52   :  { %386 = vst [vmem:[#allocation2 + $0x500] sm:$0xff] %v385_v32  ;;  %v391_v35 = vld [vmem:[%s7056_s4 + $0x518] sm:$0xff]  ;;  %388 = vst [vmem:[#allocation2 + $0x508] sm:$0xff] %v387_v33  ;;  %v393_v36 = vld [vmem:[%s7056_s4 + $0x520] sm:$0xff] }
  0x53   :  { %390 = vst [vmem:[#allocation2 + $0x510] sm:$0xff] %v389_v34  ;;  %392 = vst [vmem:[#allocation2 + $0x518] sm:$0xff] %v391_v35  ;;  %v395_v37 = vld [vmem:[%s7056_s4 + $0x528] sm:$0xff]  ;;  %v397_v38 = vld [vmem:[%s7056_s4 + $0x530] sm:$0xff] }
  0x54   :  { %394 = vst [vmem:[#allocation2 + $0x520] sm:$0xff] %v393_v36  ;;  %396 = vst [vmem:[#allocation2 + $0x528] sm:$0xff] %v395_v37  ;;  %v399_v39 = vld [vmem:[%s7056_s4 + $0x538] sm:$0xff]  ;;  %v401_v40 = vld [vmem:[%s7056_s4 + $0x540] sm:$0xff] }
  0x55   :  { %398 = vst [vmem:[#allocation2 + $0x530] sm:$0xff] %v397_v38  ;;  %v403_v41 = vld [vmem:[%s7056_s4 + $0x548] sm:$0xff]  ;;  %400 = vst [vmem:[#allocation2 + $0x538] sm:$0xff] %v399_v39  ;;  %v405_v42 = vld [vmem:[%s7056_s4 + $0x550] sm:$0xff] }
  0x56   :  { %402 = vst [vmem:[#allocation2 + $0x540] sm:$0xff] %v401_v40  ;;  %404 = vst [vmem:[#allocation2 + $0x548] sm:$0xff] %v403_v41  ;;  %v407_v43 = vld [vmem:[%s7056_s4 + $0x558] sm:$0xff]  ;;  %v409_v44 = vld [vmem:[%s7056_s4 + $0x560] sm:$0xff] }
  0x57   :  { %406 = vst [vmem:[#allocation2 + $0x550] sm:$0xff] %v405_v42  ;;  %408 = vst [vmem:[#allocation2 + $0x558] sm:$0xff] %v407_v43  ;;  %v411_v45 = vld [vmem:[%s7056_s4 + $0x568] sm:$0xff]  ;;  %v413_v46 = vld [vmem:[%s7056_s4 + $0x570] sm:$0xff] }
  0x58   :  { %410 = vst [vmem:[#allocation2 + $0x560] sm:$0xff] %v409_v44  ;;  %v415_v47 = vld [vmem:[%s7056_s4 + $0x578] sm:$0xff]  ;;  %412 = vst [vmem:[#allocation2 + $0x568] sm:$0xff] %v411_v45  ;;  %v417_v48 = vld [vmem:[%s7056_s4 + $0x580] sm:$0xff] }
  0x59   :  { %414 = vst [vmem:[#allocation2 + $0x570] sm:$0xff] %v413_v46  ;;  %416 = vst [vmem:[#allocation2 + $0x578] sm:$0xff] %v415_v47  ;;  %v419_v49 = vld [vmem:[%s7056_s4 + $0x588] sm:$0xff]  ;;  %v421_v50 = vld [vmem:[%s7056_s4 + $0x590] sm:$0xff] }
  0x5a   :  { %418 = vst [vmem:[#allocation2 + $0x580] sm:$0xff] %v417_v48  ;;  %420 = vst [vmem:[#allocation2 + $0x588] sm:$0xff] %v419_v49  ;;  %v423_v51 = vld [vmem:[%s7056_s4 + $0x598] sm:$0xff]  ;;  %v425_v52 = vld [vmem:[%s7056_s4 + $0x5a0] sm:$0xff] }
  0x5b   :  { %422 = vst [vmem:[#allocation2 + $0x590] sm:$0xff] %v421_v50  ;;  %v427_v53 = vld [vmem:[%s7056_s4 + $0x5a8] sm:$0xff]  ;;  %424 = vst [vmem:[#allocation2 + $0x598] sm:$0xff] %v423_v51  ;;  %v429_v54 = vld [vmem:[%s7056_s4 + $0x5b0] sm:$0xff] }
  0x5c   :  { %426 = vst [vmem:[#allocation2 + $0x5a0] sm:$0xff] %v425_v52  ;;  %428 = vst [vmem:[#allocation2 + $0x5a8] sm:$0xff] %v427_v53  ;;  %v431_v55 = vld [vmem:[%s7056_s4 + $0x5b8] sm:$0xff]  ;;  %v433_v56 = vld [vmem:[%s7056_s4 + $0x5c0] sm:$0xff] }
  0x5d   :  { %430 = vst [vmem:[#allocation2 + $0x5b0] sm:$0xff] %v429_v54  ;;  %432 = vst [vmem:[#allocation2 + $0x5b8] sm:$0xff] %v431_v55  ;;  %v435_v57 = vld [vmem:[%s7056_s4 + $0x5c8] sm:$0xff]  ;;  %v437_v58 = vld [vmem:[%s7056_s4 + $0x5d0] sm:$0xff] }
  0x5e   :  { %434 = vst [vmem:[#allocation2 + $0x5c0] sm:$0xff] %v433_v56  ;;  %v439_v59 = vld [vmem:[%s7056_s4 + $0x5d8] sm:$0xff]  ;;  %436 = vst [vmem:[#allocation2 + $0x5c8] sm:$0xff] %v435_v57  ;;  %v441_v60 = vld [vmem:[%s7056_s4 + $0x5e0] sm:$0xff] }
  0x5f   :  { %438 = vst [vmem:[#allocation2 + $0x5d0] sm:$0xff] %v437_v58  ;;  %440 = vst [vmem:[#allocation2 + $0x5d8] sm:$0xff] %v439_v59  ;;  %v443_v61 = vld [vmem:[%s7056_s4 + $0x5e8] sm:$0xff]  ;;  %v445_v62 = vld [vmem:[%s7056_s4 + $0x5f0] sm:$0xff] }
  0x60   :  { %442 = vst [vmem:[#allocation2 + $0x5e0] sm:$0xff] %v441_v60  ;;  %444 = vst [vmem:[#allocation2 + $0x5e8] sm:$0xff] %v443_v61  ;;  %v447_v63 = vld [vmem:[%s7056_s4 + $0x5f8] sm:$0xff]  ;;  %v449_v0 = vld [vmem:[%s7056_s4 + $0x600] sm:$0xff] }
  0x61   :  { %446 = vst [vmem:[#allocation2 + $0x5f0] sm:$0xff] %v445_v62  ;;  %v451_v1 = vld [vmem:[%s7056_s4 + $0x608] sm:$0xff]  ;;  %448 = vst [vmem:[#allocation2 + $0x5f8] sm:$0xff] %v447_v63  ;;  %v453_v2 = vld [vmem:[%s7056_s4 + $0x610] sm:$0xff] }
  0x62   :  { %450 = vst [vmem:[#allocation2 + $0x600] sm:$0xff] %v449_v0  ;;  %452 = vst [vmem:[#allocation2 + $0x608] sm:$0xff] %v451_v1  ;;  %v455_v3 = vld [vmem:[%s7056_s4 + $0x618] sm:$0xff]  ;;  %v457_v4 = vld [vmem:[%s7056_s4 + $0x620] sm:$0xff] }
  0x63   :  { %454 = vst [vmem:[#allocation2 + $0x610] sm:$0xff] %v453_v2  ;;  %456 = vst [vmem:[#allocation2 + $0x618] sm:$0xff] %v455_v3  ;;  %v459_v5 = vld [vmem:[%s7056_s4 + $0x628] sm:$0xff]  ;;  %v461_v6 = vld [vmem:[%s7056_s4 + $0x630] sm:$0xff]  ;;  %v603_v3 = vlaneseq }
  0x64   :  { %458 = vst [vmem:[#allocation2 + $0x620] sm:$0xff] %v457_v4  ;;  %v463_v7 = vld [vmem:[%s7056_s4 + $0x638] sm:$0xff]  ;;  %460 = vst [vmem:[#allocation2 + $0x628] sm:$0xff] %v459_v5  ;;  %v465_v8 = vld [vmem:[%s7056_s4 + $0x640] sm:$0xff] }
  0x65   :  { %462 = vst [vmem:[#allocation2 + $0x630] sm:$0xff] %v461_v6  ;;  %464 = vst [vmem:[#allocation2 + $0x638] sm:$0xff] %v463_v7  ;;  %v467_v9 = vld [vmem:[%s7056_s4 + $0x648] sm:$0xff]  ;;  %v469_v10 = vld [vmem:[%s7056_s4 + $0x650] sm:$0xff] }
  0x66   :  { %466 = vst [vmem:[#allocation2 + $0x640] sm:$0xff] %v465_v8  ;;  %468 = vst [vmem:[#allocation2 + $0x648] sm:$0xff] %v467_v9  ;;  %v471_v11 = vld [vmem:[%s7056_s4 + $0x658] sm:$0xff]  ;;  %v473_v12 = vld [vmem:[%s7056_s4 + $0x660] sm:$0xff] }
  0x67   :  { %470 = vst [vmem:[#allocation2 + $0x650] sm:$0xff] %v469_v10  ;;  %v475_v13 = vld [vmem:[%s7056_s4 + $0x668] sm:$0xff]  ;;  %472 = vst [vmem:[#allocation2 + $0x658] sm:$0xff] %v471_v11  ;;  %v477_v14 = vld [vmem:[%s7056_s4 + $0x670] sm:$0xff] }
  0x68   :  { %474 = vst [vmem:[#allocation2 + $0x660] sm:$0xff] %v473_v12  ;;  %476 = vst [vmem:[#allocation2 + $0x668] sm:$0xff] %v475_v13  ;;  %v479_v15 = vld [vmem:[%s7056_s4 + $0x678] sm:$0xff]  ;;  %v481_v16 = vld [vmem:[%s7056_s4 + $0x680] sm:$0xff] }
  0x69   :  { %478 = vst [vmem:[#allocation2 + $0x670] sm:$0xff] %v477_v14  ;;  %480 = vst [vmem:[#allocation2 + $0x678] sm:$0xff] %v479_v15  ;;  %v483_v17 = vld [vmem:[%s7056_s4 + $0x688] sm:$0xff]  ;;  %v485_v18 = vld [vmem:[%s7056_s4 + $0x690] sm:$0xff] }
  0x6a   :  { %482 = vst [vmem:[#allocation2 + $0x680] sm:$0xff] %v481_v16  ;;  %v487_v19 = vld [vmem:[%s7056_s4 + $0x698] sm:$0xff]  ;;  %484 = vst [vmem:[#allocation2 + $0x688] sm:$0xff] %v483_v17  ;;  %v489_v20 = vld [vmem:[%s7056_s4 + $0x6a0] sm:$0xff] }
  0x6b   :  { %486 = vst [vmem:[#allocation2 + $0x690] sm:$0xff] %v485_v18  ;;  %488 = vst [vmem:[#allocation2 + $0x698] sm:$0xff] %v487_v19  ;;  %v491_v21 = vld [vmem:[%s7056_s4 + $0x6a8] sm:$0xff]  ;;  %v493_v22 = vld [vmem:[%s7056_s4 + $0x6b0] sm:$0xff] }
  0x6c   :  { %490 = vst [vmem:[#allocation2 + $0x6a0] sm:$0xff] %v489_v20  ;;  %492 = vst [vmem:[#allocation2 + $0x6a8] sm:$0xff] %v491_v21  ;;  %v495_v23 = vld [vmem:[%s7056_s4 + $0x6b8] sm:$0xff]  ;;  %v497_v24 = vld [vmem:[%s7056_s4 + $0x6c0] sm:$0xff] }
  0x6d   :  { %494 = vst [vmem:[#allocation2 + $0x6b0] sm:$0xff] %v493_v22  ;;  %v499_v25 = vld [vmem:[%s7056_s4 + $0x6c8] sm:$0xff]  ;;  %496 = vst [vmem:[#allocation2 + $0x6b8] sm:$0xff] %v495_v23  ;;  %v501_v26 = vld [vmem:[%s7056_s4 + $0x6d0] sm:$0xff] }
  0x6e   :  { %498 = vst [vmem:[#allocation2 + $0x6c0] sm:$0xff] %v497_v24  ;;  %500 = vst [vmem:[#allocation2 + $0x6c8] sm:$0xff] %v499_v25  ;;  %v503_v27 = vld [vmem:[%s7056_s4 + $0x6d8] sm:$0xff]  ;;  %v505_v28 = vld [vmem:[%s7056_s4 + $0x6e0] sm:$0xff] }
  0x6f   :  { %502 = vst [vmem:[#allocation2 + $0x6d0] sm:$0xff] %v501_v26  ;;  %504 = vst [vmem:[#allocation2 + $0x6d8] sm:$0xff] %v503_v27  ;;  %v507_v29 = vld [vmem:[%s7056_s4 + $0x6e8] sm:$0xff]  ;;  %v509_v30 = vld [vmem:[%s7056_s4 + $0x6f0] sm:$0xff] }
  0x70   :  { %506 = vst [vmem:[#allocation2 + $0x6e0] sm:$0xff] %v505_v28  ;;  %v511_v31 = vld [vmem:[%s7056_s4 + $0x6f8] sm:$0xff]  ;;  %508 = vst [vmem:[#allocation2 + $0x6e8] sm:$0xff] %v507_v29  ;;  %v513_v32 = vld [vmem:[%s7056_s4 + $0x700] sm:$0xff] }
  0x71   :  { %510 = vst [vmem:[#allocation2 + $0x6f0] sm:$0xff] %v509_v30  ;;  %512 = vst [vmem:[#allocation2 + $0x6f8] sm:$0xff] %v511_v31  ;;  %v515_v33 = vld [vmem:[%s7056_s4 + $0x708] sm:$0xff]  ;;  %v517_v34 = vld [vmem:[%s7056_s4 + $0x710] sm:$0xff] }
  0x72   :  { %514 = vst [vmem:[#allocation2 + $0x700] sm:$0xff] %v513_v32  ;;  %516 = vst [vmem:[#allocation2 + $0x708] sm:$0xff] %v515_v33  ;;  %v519_v35 = vld [vmem:[%s7056_s4 + $0x718] sm:$0xff]  ;;  %v521_v36 = vld [vmem:[%s7056_s4 + $0x720] sm:$0xff] }
  0x73   :  { %518 = vst [vmem:[#allocation2 + $0x710] sm:$0xff] %v517_v34  ;;  %v523_v37 = vld [vmem:[%s7056_s4 + $0x728] sm:$0xff]  ;;  %520 = vst [vmem:[#allocation2 + $0x718] sm:$0xff] %v519_v35  ;;  %v525_v38 = vld [vmem:[%s7056_s4 + $0x730] sm:$0xff] }
  0x74   :  { %522 = vst [vmem:[#allocation2 + $0x720] sm:$0xff] %v521_v36  ;;  %524 = vst [vmem:[#allocation2 + $0x728] sm:$0xff] %v523_v37  ;;  %v527_v39 = vld [vmem:[%s7056_s4 + $0x738] sm:$0xff]  ;;  %v529_v40 = vld [vmem:[%s7056_s4 + $0x740] sm:$0xff] }
  0x75   :  { %526 = vst [vmem:[#allocation2 + $0x730] sm:$0xff] %v525_v38  ;;  %528 = vst [vmem:[#allocation2 + $0x738] sm:$0xff] %v527_v39  ;;  %v531_v41 = vld [vmem:[%s7056_s4 + $0x748] sm:$0xff]  ;;  %v533_v42 = vld [vmem:[%s7056_s4 + $0x750] sm:$0xff] }
  0x76   :  { %530 = vst [vmem:[#allocation2 + $0x740] sm:$0xff] %v529_v40  ;;  %v535_v43 = vld [vmem:[%s7056_s4 + $0x758] sm:$0xff]  ;;  %532 = vst [vmem:[#allocation2 + $0x748] sm:$0xff] %v531_v41  ;;  %v537_v44 = vld [vmem:[%s7056_s4 + $0x760] sm:$0xff] }
  0x77   :  { %534 = vst [vmem:[#allocation2 + $0x750] sm:$0xff] %v533_v42  ;;  %536 = vst [vmem:[#allocation2 + $0x758] sm:$0xff] %v535_v43  ;;  %v539_v45 = vld [vmem:[%s7056_s4 + $0x768] sm:$0xff]  ;;  %v541_v46 = vld [vmem:[%s7056_s4 + $0x770] sm:$0xff] }
  0x78   :  { %538 = vst [vmem:[#allocation2 + $0x760] sm:$0xff] %v537_v44  ;;  %540 = vst [vmem:[#allocation2 + $0x768] sm:$0xff] %v539_v45  ;;  %v543_v47 = vld [vmem:[%s7056_s4 + $0x778] sm:$0xff]  ;;  %v545_v48 = vld [vmem:[%s7056_s4 + $0x780] sm:$0xff] }
  0x79   :  { %542 = vst [vmem:[#allocation2 + $0x770] sm:$0xff] %v541_v46  ;;  %v547_v49 = vld [vmem:[%s7056_s4 + $0x788] sm:$0xff]  ;;  %544 = vst [vmem:[#allocation2 + $0x778] sm:$0xff] %v543_v47  ;;  %v549_v50 = vld [vmem:[%s7056_s4 + $0x790] sm:$0xff] }
  0x7a   :  { %546 = vst [vmem:[#allocation2 + $0x780] sm:$0xff] %v545_v48  ;;  %548 = vst [vmem:[#allocation2 + $0x788] sm:$0xff] %v547_v49  ;;  %v551_v51 = vld [vmem:[%s7056_s4 + $0x798] sm:$0xff]  ;;  %v553_v52 = vld [vmem:[%s7056_s4 + $0x7a0] sm:$0xff] }
  0x7b   :  { %550 = vst [vmem:[#allocation2 + $0x790] sm:$0xff] %v549_v50  ;;  %552 = vst [vmem:[#allocation2 + $0x798] sm:$0xff] %v551_v51  ;;  %v555_v53 = vld [vmem:[%s7056_s4 + $0x7a8] sm:$0xff]  ;;  %v557_v54 = vld [vmem:[%s7056_s4 + $0x7b0] sm:$0xff] }
  0x7c   :  { %554 = vst [vmem:[#allocation2 + $0x7a0] sm:$0xff] %v553_v52  ;;  %v559_v55 = vld [vmem:[%s7056_s4 + $0x7b8] sm:$0xff]  ;;  %556 = vst [vmem:[#allocation2 + $0x7a8] sm:$0xff] %v555_v53  ;;  %v561_v56 = vld [vmem:[%s7056_s4 + $0x7c0] sm:$0xff] }
  0x7d   :  { %558 = vst [vmem:[#allocation2 + $0x7b0] sm:$0xff] %v557_v54  ;;  %560 = vst [vmem:[#allocation2 + $0x7b8] sm:$0xff] %v559_v55  ;;  %v563_v57 = vld [vmem:[%s7056_s4 + $0x7c8] sm:$0xff]  ;;  %v565_v58 = vld [vmem:[%s7056_s4 + $0x7d0] sm:$0xff] }
  0x7e   :  { %562 = vst [vmem:[#allocation2 + $0x7c0] sm:$0xff] %v561_v56  ;;  %564 = vst [vmem:[#allocation2 + $0x7c8] sm:$0xff] %v563_v57  ;;  %v567_v59 = vld [vmem:[%s7056_s4 + $0x7d8] sm:$0xff]  ;;  %v569_v60 = vld [vmem:[%s7056_s4 + $0x7e0] sm:$0xff] }
  0x7f   :  { %566 = vst [vmem:[#allocation2 + $0x7d0] sm:$0xff] %v565_v58  ;;  %v571_v61 = vld [vmem:[%s7056_s4 + $0x7e8] sm:$0xff]  ;;  %568 = vst [vmem:[#allocation2 + $0x7d8] sm:$0xff] %v567_v59  ;;  %v573_v62 = vld [vmem:[%s7056_s4 + $0x7f0] sm:$0xff] }
  0x80   :  { %570 = vst [vmem:[#allocation2 + $0x7e0] sm:$0xff] %v569_v60  ;;  %572 = vst [vmem:[#allocation2 + $0x7e8] sm:$0xff] %v571_v61  ;;  %v575_v63 = vld [vmem:[%s7056_s4 + $0x7f8] sm:$0xff]  ;;  %v595_v0 = vld [vmem:[%s7052_s0] sm:$0xff] }
  0x81   :  { %574 = vst [vmem:[#allocation2 + $0x7f0] sm:$0xff] %v573_v62  ;;  %576 = vst [vmem:[#allocation2 + $0x7f8] sm:$0xff] %v575_v63  ;;  %v596_v1 = vld [vmem:[%s7052_s0 + $0x8] sm:$0xff]  ;;  %v597_v2 = vld [vmem:[%s7052_s0 + $0x10] sm:$0xff] }
  0x82   :  { %v5315_v4 = vpack.i.bf16 %v596_v1, %v595_v0  ;;  %v598_v5 = vld [vmem:[%s7052_s0 + $0x18] sm:$0xff] }
  0x83   :  { %584 = vsyncadd [#allocation3], 32768  ;;  %v5693_v6 = vmov 0   ;;  %v600_v7 = vrot.slane %v596_v1, 7  ;;  %v599_v8 = vrot.slane %v595_v0, 7  ;;  %v602_v9 = vrot.slane %v598_v5, 7 }
  0x84   :  { %758 = vmatprep.subr.bf16.mxu0 %v5693_v6  ;;  %v5325_v10 = vld [vmem:[%s7054_s2 + $0x38] sm:$0xff]   ;;  %s5694_s26 = smov 64   ;;  %v617_v11 = vrot.slane %v598_v5, 1  ;;  %v5320_v12 = vpack.i.bf16 %v598_v5, %v597_v2  ;;  %v601_v13 = vrot.slane %v597_v2, 7  ;;  %v5326_v14 = vld [vmem:[%s7054_s2 + $0x30] sm:$0xff]   ;;  %v6539_v15 = vshrl.u32 %v603_v3, 7 }
  0x85   :  { %5316 = vrot.lane.b32.xlu0 %v5315_v4, %s5694_s26  ;;  %759 = vmatpush1.bf16.msra.mxu0 %v5325_v10  ;;  %v616_v16 = vrot.slane %v597_v2, 1  ;;  %v614_v17 = vrot.slane %v595_v0, 1  ;;  %v615_v18 = vrot.slane %v596_v1, 1  ;;  %v5327_v20 = vld [vmem:[%s7054_s2 + $0x28] sm:$0xff]   ;;  %v5328_v26 = vld [vmem:[%s7054_s2 + $0x20] sm:$0xff]   ;;  %v6576_v30 = vld [vmem:[%s7060_s8 + $0x18] sm:$0xff] }
  0x86   :  { %760 = vmatprep.subr.bf16.mxu0 %v5693_v6  ;;  %vm618_vm0 = vcmp.lt.s32.totalorder %v6539_v15, 7  ;;  %vm605_vm1 = vcmp.lt.s32.totalorder %v6539_v15, 1  ;;  %v6571_v29 = vld [vmem:[%s7060_s8 + $0x8] sm:$0xff]  ;;  %v5329_v32 = vld [vmem:[%s7054_s2 + $0x18] sm:$0xff]   ;;  %v5330_v38 = vld [vmem:[%s7054_s2 + $0x10] sm:$0xff]   ;;  %vm643_vm2 = vcmask 523264  }
  0x87   :  { %v619_v19 = vsel %vm618_vm0, %v616_v16, %v617_v11  ;;  %v608_v21 = vsel %vm605_vm1, %v599_v8, %v600_v7  ;;  %v609_v22 = vsel %vm605_vm1, %v602_v9, %v599_v8  ;;  %v622_v23 = vsel %vm618_vm0, %v617_v11, %v614_v17  ;;  %v6586_v34 = vld [vmem:[%s7060_s8 + $0x28] sm:$0xff]  ;;  %v6591_v35 = vld [vmem:[%s7060_s8 + $0x38] sm:$0xff]  ;;  %v5332_v42 = vld [vmem:[%s7054_s2] sm:$0xff]  }
  0x88   :  { %v606_v24 = vsel %vm605_vm1, %v601_v13, %v602_v9  ;;  %v607_v25 = vsel %vm605_vm1, %v600_v7, %v601_v13  ;;  %v621_v27 = vsel %vm618_vm0, %v614_v17, %v615_v18  ;;  %v620_v28 = vsel %vm618_vm0, %v615_v18, %v616_v16  ;;  %v5331_v41 = vld [vmem:[%s7054_s2 + $0x8] sm:$0xff]   ;;  %v5333_v43 = vld [vmem:[%s7054_s2 + $0x58] sm:$0xff]   ;;  %v5334_v44 = vld [vmem:[%s7054_s2 + $0x50] sm:$0xff]  }
  0x89   :  { %5321 = vrot.lane.b32.xlu0 %v5320_v12, %s5694_s26  ;;  %761 = vmatpush1.bf16.msra.mxu0 %v5326_v14  ;;  %v623_v31 = vmul.f32 %v621_v27, %v6571_v29  ;;  %v624_v33 = vmul.f32 %v620_v28, %v6576_v30  ;;  %v625_v36 = vmul.f32 %v619_v19, %v6586_v34  ;;  %v5335_v45 = vld [vmem:[%s7054_s2 + $0x48] sm:$0xff]   ;;  %v5336_v46 = vld [vmem:[%s7054_s2 + $0x40] sm:$0xff]   ;;  %v6633_v48 = vld [vmem:[%s7060_s8 + $0x10] sm:$0xff]  ;;  %v5695_v3 = vmov 0.0  }
  0x8a   :  { %762 = vmatprep.subr.bf16.mxu0 %v5693_v6  ;;  %v626_v37 = vmul.f32 %v622_v23, %v6591_v35  ;;  %v6628_v47 = vld [vmem:[%s7060_s8] sm:$0xff]  ;;  %v611_v50 = vmul.f32 %v608_v21, %v6633_v48  ;;  %v6645_v53 = vld [vmem:[%s7060_s8 + $0x30] sm:$0xff]  ;;  %5260 = vmatprep.subr.mxu1 %v5695_v3  ;;  %v846_v4 = vld [vmem:[%s7059_s7 + $0x78] sm:$0xff]  ;;  %vm5696_vm3 = vmmov 0   ;;  %v678_v23 = vsub.s32 0, %v6539_v15 }
  0x8b   :  { %v649_v39 = vpack.c.bf16 %v624_v33, %v623_v31  ;;  %v610_v49 = vmul.f32 %v609_v22, %v6628_v47  ;;  %v6640_v52 = vld [vmem:[%s7060_s8 + $0x20] sm:$0xff]  ;;  %v613_v59 = vmul.f32 %v606_v24, %v6645_v53  ;;  %5261 = vmatpush3.msra.mxu1 %v846_v4  ;;  %v845_v5 = vld [vmem:[%s7059_s7 + $0x70] sm:$0xff]  ;;  %v844_v7 = vld [vmem:[%s7059_s7 + $0x68] sm:$0xff]  ;;  %5292 = vmatprep.mubr.msk.f32.mxu1 %vm5696_vm3, %v5695_v3  ;;  %vm829_vm4 = vcmask 1040384  }
  0x8c   :  { %v651_v40 = vpack.c.bf16 %v626_v37, %v625_v36  ;;  %v612_v58 = vmul.f32 %v607_v25, %v6640_v52  ;;  %5262 = vmatprep.subr.mxu1 %v5695_v3  ;;  %v843_v8 = vld [vmem:[%s7059_s7 + $0x60] sm:$0xff]  ;;  %v842_v9 = vld [vmem:[%s7059_s7 + $0x58] sm:$0xff]  ;;  %v841_v10 = vld [vmem:[%s7059_s7 + $0x50] sm:$0xff] }
  0x8d   :  { %763 = vmatpush1.bf16.msra.mxu0 %v5327_v20  ;;  %4578 = vmatprep.mubr.msk.bf16.mxu0 %vm643_vm2, %v649_v39  ;;  %v840_v11 = vld [vmem:[%s7059_s7 + $0x48] sm:$0xff]  ;;  %v839_v12 = vld [vmem:[%s7059_s7 + $0x40] sm:$0xff]  ;;  %v838_v13 = vld [vmem:[%s7059_s7 + $0x38] sm:$0xff] }
  0x8e   :  { %764 = vmatprep.subr.bf16.mxu0 %v5693_v6  ;;  %5263 = vmatpush3.msra.mxu1 %v845_v5  ;;  %v837_v14 = vld [vmem:[%s7059_s7 + $0x30] sm:$0xff]  ;;  %v836_v16 = vld [vmem:[%s7059_s7 + $0x28] sm:$0xff]  ;;  %v835_v17 = vld [vmem:[%s7059_s7 + $0x20] sm:$0xff] }
  0x8f   :  { %5264 = vmatprep.subr.mxu1 %v5695_v3  ;;  %v834_v18 = vld [vmem:[%s7059_s7 + $0x18] sm:$0xff]  ;;  %v833_v19 = vld [vmem:[%s7059_s7 + $0x10] sm:$0xff]  ;;  %v832_v20 = vld [vmem:[%s7059_s7 + $0x8] sm:$0xff] }
  0x90   :  { %5265 = vmatpush3.msra.mxu1 %v844_v7  ;;  %v831_v21 = vld [vmem:[%s7059_s7] sm:$0xff]  ;;  %v5339_v22 = vld [vmem:[%s7055_s3 + $0x74] ss:$8 sps:$4 sm:$0xff]   ;;  %v5337_v5 = vld [vmem:[%s7055_s3 + $0x70] ss:$8 sps:$4 sm:$0xff]  }
  0x91   :  { %765 = vmatpush1.bf16.msra.mxu0 %v5328_v26  ;;  %5266 = vmatprep.subr.mxu1 %v5695_v3  ;;  %v6728_v24 = vld [vmem:[%s7058_s6] sm:$0xff] }
  0x92   :  { %766 = vmatprep.subr.bf16.mxu0 %v5693_v6  ;;  %5267 = vmatpush3.msra.mxu1 %v843_v8  ;;  %v679_v27 = vrot.slane %v6728_v24, %v678_v23  ;;  %v5342_v7 = vld [vmem:[%s7055_s3 + $0x64] ss:$8 sps:$4 sm:$0xff]   ;;  %v5363_v23 = vld [vmem:[%s7055_s3 + $0xf4] ss:$8 sps:$4 sm:$0xff]  }
  0x93   :  { %5268 = vmatprep.subr.mxu1 %v5695_v3 }
  0x94   :  { %5269 = vmatpush3.msra.mxu1 %v842_v9  ;;  %v5340_v9 = vld [vmem:[%s7055_s3 + $0x60] ss:$8 sps:$4 sm:$0xff]  }
  0x95   :  { %767 = vmatpush1.bf16.msra.mxu0 %v5329_v32  ;;  %5270 = vmatprep.subr.mxu1 %v5695_v3 }
  0x96   :  { %768 = vmatprep.subr.bf16.mxu0 %v5693_v6  ;;  %5271 = vmatpush3.msra.mxu1 %v841_v10  ;;  %v5345_v10 = vld [vmem:[%s7055_s3 + $0x54] ss:$8 sps:$4 sm:$0xff]  }
  0x97   :  { %5272 = vmatprep.subr.mxu1 %v5695_v3 }
  0x98   :  { %5273 = vmatpush3.msra.mxu1 %v840_v11  ;;  %v5343_v11 = vld [vmem:[%s7055_s3 + $0x50] ss:$8 sps:$4 sm:$0xff]  }
  0x99   :  { %769 = vmatpush1.bf16.msra.mxu0 %v5330_v38  ;;  %5274 = vmatprep.subr.mxu1 %v5695_v3 }
  0x9a   :  { %770 = vmatprep.subr.bf16.mxu0 %v5693_v6  ;;  %5275 = vmatpush3.msra.mxu1 %v839_v12  ;;  %v5348_v12 = vld [vmem:[%s7055_s3 + $0x44] ss:$8 sps:$4 sm:$0xff]  }
  0x9b   :  { %5276 = vmatprep.subr.mxu1 %v5695_v3 }
  0x9c   :  { %5277 = vmatpush3.msra.mxu1 %v838_v13  ;;  %v5346_v13 = vld [vmem:[%s7055_s3 + $0x40] ss:$8 sps:$4 sm:$0xff]  }
  0x9d   :  { %771 = vmatpush1.bf16.msra.mxu0 %v5331_v41  ;;  %5278 = vmatprep.subr.mxu1 %v5695_v3 }
  0x9e   :  { %772 = vmatprep.subr.bf16.mxu0 %v5693_v6  ;;  %5279 = vmatpush3.msra.mxu1 %v837_v14  ;;  %v5351_v14 = vld [vmem:[%s7055_s3 + $0x34] ss:$8 sps:$4 sm:$0xff]  }
  0x9f   :  { %5280 = vmatprep.subr.mxu1 %v5695_v3 }
  0xa0   :  { %5281 = vmatpush3.msra.mxu1 %v836_v16  ;;  %v5349_v16 = vld [vmem:[%s7055_s3 + $0x30] ss:$8 sps:$4 sm:$0xff]  }
  0xa1   :  { %773 = vmatpush1.bf16.msra.mxu0 %v5332_v42  ;;  %5282 = vmatprep.subr.mxu1 %v5695_v3 }
  0xa2   :  { %782 = vmatprep.subr.bf16.mxu0 %v5693_v6  ;;  %5283 = vmatpush3.msra.mxu1 %v835_v17  ;;  %v5354_v17 = vld [vmem:[%s7055_s3 + $0x24] ss:$8 sps:$4 sm:$0xff]  }
  0xa3   :  { %5284 = vmatprep.subr.mxu1 %v5695_v3 }
  0xa4   :  { %5285 = vmatpush3.msra.mxu1 %v834_v18  ;;  %v5352_v18 = vld [vmem:[%s7055_s3 + $0x20] ss:$8 sps:$4 sm:$0xff]  }
  0xa5   :  { %783 = vmatpush2.bf16.msra.mxu0 %v5333_v43  ;;  %5286 = vmatprep.subr.mxu1 %v5695_v3 }
  0xa6   :  { %784 = vmatprep.subr.bf16.mxu0 %v5693_v6  ;;  %5287 = vmatpush3.msra.mxu1 %v833_v19  ;;  %v5357_v19 = vld [vmem:[%s7055_s3 + $0x14] ss:$8 sps:$4 sm:$0xff]  }
  0xa7   :  { %5288 = vmatprep.subr.mxu1 %v5695_v3 }
  0xa8   :  { %5289 = vmatpush3.msra.mxu1 %v832_v20  ;;  %v5355_v20 = vld [vmem:[%s7055_s3 + $0x10] ss:$8 sps:$4 sm:$0xff]  }
  0xa9   :  { %785 = vmatpush2.bf16.msra.mxu0 %v5334_v44  ;;  %5290 = vmatprep.subr.mxu1 %v5695_v3 }
  0xaa   :  { %786 = vmatprep.subr.bf16.mxu0 %v5693_v6  ;;  %5291 = vmatpush3.msra.mxu1 %v831_v21  ;;  %v5360_v21 = vld [vmem:[%s7055_s3 + $0x4] ss:$8 sps:$4 sm:$0xff]  }
  0xab   :  { %1279 = vmatprep.subr.bf16.mxu1 %v5339_v22  ;;  %v5358_v22 = vld [vmem:[%s7055_s3] ss:$8 sps:$4 sm:$0xff]  }
  0xad   :  { %787 = vmatpush2.bf16.msra.mxu0 %v5335_v45 }
  0xae   :  { %788 = vmatprep.subr.bf16.mxu0 %v5693_v6 }
  0xb1   :  { %789 = vmatpush2.bf16.msra.mxu0 %v5336_v46 }
  0xf7   :  { %v5317_v51 = vpop.permute.xlu0 %5316 }
  0xf8   :  { %v5319_v54 = vunpack.i.h.bf16 %v5317_v51  ;;  %v5318_v55 = vunpack.i.l.bf16 %v5317_v51 }
  0xfa   :  { %v644_v56 = vsel %vm643_vm2, %v610_v49, %v5318_v55  ;;  %v645_v57 = vsel %vm643_vm2, %v611_v50, %v5319_v54 }
  0xfb   :  { %v648_v60 = vpack.c.bf16 %v645_v57, %v644_v56  ;;  %v5322_v61 = vpop.permute.xlu0 %5321 }
  0xfc   :  { %v5324_v62 = vunpack.i.h.bf16 %v5322_v61  ;;  %v5323_v63 = vunpack.i.l.bf16 %v5322_v61 }
  0xfd   :  { %791 = vmatmul.mubr.bf16.vlgmr.msra.gmra.mxu0 %v648_v60 }
  0xfe   :  { %4579 = vmatprep.mubr.msk.bf16.mxu0 %vm643_vm2, %v651_v40  ;;  %v646_v0 = vsel %vm643_vm2, %v612_v58, %v5323_v63  ;;  %v647_v1 = vsel %vm643_vm2, %v613_v59, %v5324_v62 }
  0xff   :  { %v650_v2 = vpack.c.bf16 %v647_v1, %v646_v0 }
 0x105   :  { %799 = vmatmul.mubr.bf16.gmra.mxu0 %v650_v2 }
 0x106   :  { %1364 = vmatprep.mubr.bf16.mxu0 %v5693_v6 }
 0x1bd   :  { %v792_v25 = vpop.f32.mrf.mxu0 }
 0x1be   :  { %v6733_v33 = vadd.f32 %v792_v25, %v679_v27  ;;  %v5366_v25 = vld [vmem:[%s7055_s3 + $0x174] ss:$8 sps:$4 sm:$0xff]  }
 0x1bf   :  { %v794_v26 = vpop.f32.mrf.mxu0  ;;  %1332 = vmatprep.subr.bf16.mxu0 %v5366_v25 }
 0x1c0   :  { %v816_v40 = vmul.f32 %v6733_v33, %v6733_v33  ;;  %v5361_v26 = vld [vmem:[%s7055_s3 + $0xf0] ss:$8 sps:$4 sm:$0xff]  }
 0x1c1   :  { %v795_v28 = vpop.f32.mrf.mxu0 }
 0x1c2   :  { %v6731_v31 = vadd.f32 %v795_v28, %v679_v27  ;;  %v5369_v28 = vld [vmem:[%s7055_s3 + $0xe4] ss:$8 sps:$4 sm:$0xff]  }
 0x1c3   :  { %v797_v32 = vpop.f32.mrf.mxu0 }
 0x1c4   :  { %v817_v37 = vmul.f32 %v6731_v31, %v6731_v31  ;;  %v807_v41 = vadd.f32 %v6731_v31, %v6733_v33  ;;  %v5372_v32 = vld [vmem:[%s7055_s3 + $0x164] ss:$8 sps:$4 sm:$0xff]  }
 0x1c5   :  { %v800_v36 = vpop.f32.mrf.mxu0 }
 0x1c6   :  { %v6737_v38 = vadd.f32 %v800_v36, %v679_v27  ;;  %v820_v44 = vadd.f32 %v817_v37, %v816_v40  ;;  %v5367_v36 = vld [vmem:[%s7055_s3 + $0xe0] ss:$8 sps:$4 sm:$0xff]   ;;  %v5378_v40 = vld [vmem:[%s7055_s3 + $0x154] ss:$8 sps:$4 sm:$0xff]  }
 0x1c7   :  { %v802_v39 = vpop.f32.mrf.mxu0  ;;  %v5370_v37 = vld [vmem:[%s7055_s3 + $0x160] ss:$8 sps:$4 sm:$0xff]  }
 0x1c8   :  { %v818_v42 = vmul.f32 %v6737_v38, %v6737_v38  ;;  %v808_v45 = vadd.f32 %v807_v41, %v6737_v38  ;;  %v5375_v39 = vld [vmem:[%s7055_s3 + $0xd4] ss:$8 sps:$4 sm:$0xff]   ;;  %v5373_v41 = vld [vmem:[%s7055_s3 + $0xd0] ss:$8 sps:$4 sm:$0xff]  }
 0x1c9   :  { %v803_v43 = vpop.f32.mrf.mxu0 }
 0x1ca   :  { %v6746_v46 = vadd.f32 %v803_v43, %v679_v27  ;;  %v821_v50 = vadd.f32 %v820_v44, %v818_v42  ;;  %v5364_v27 = vld [vmem:[%s7055_s3 + $0x170] ss:$8 sps:$4 sm:$0xff]   ;;  %v5381_v43 = vld [vmem:[%s7055_s3 + $0xc4] ss:$8 sps:$4 sm:$0xff]  }
 0x1cb   :  { %v805_v49 = vpop.f32.mrf.mxu0  ;;  %1333 = vmatpush1.bf16.msra.mxu0 %v5364_v27  ;;  %v5376_v42 = vld [vmem:[%s7055_s3 + $0x150] ss:$8 sps:$4 sm:$0xff]   ;;  %v5384_v44 = vld [vmem:[%s7055_s3 + $0x144] ss:$8 sps:$4 sm:$0xff]  }
 0x1cc   :  { %v809_v51 = vadd.f32 %v808_v45, %v6746_v46  ;;  %v819_v54 = vmul.f32 %v6746_v46, %v6746_v46  ;;  %1334 = vmatprep.subr.bf16.mxu0 %v5372_v32  ;;  %v5379_v45 = vld [vmem:[%s7055_s3 + $0xc0] ss:$8 sps:$4 sm:$0xff]  }
 0x1cd   :  { %v5382_v49 = vld [vmem:[%s7055_s3 + $0x140] ss:$8 sps:$4 sm:$0xff]  }
 0x1ce   :  { %v810_v55 = vrot.slane %v809_v51, 4  ;;  %v822_v56 = vadd.f32 %v821_v50, %v819_v54  ;;  %v5387_v50 = vld [vmem:[%s7055_s3 + $0xb4] ss:$8 sps:$4 sm:$0xff]   ;;  %v5385_v54 = vld [vmem:[%s7055_s3 + $0xb0] ss:$8 sps:$4 sm:$0xff]  }
 0x1cf   :  { %1335 = vmatpush1.bf16.msra.mxu0 %v5370_v37 }
 0x1d0   :  { %v811_v57 = vadd.f32 %v810_v55, %v809_v51  ;;  %v823_v58 = vrot.slane %v822_v56, 4  ;;  %1336 = vmatprep.subr.bf16.mxu0 %v5378_v40  ;;  %v5390_v51 = vld [vmem:[%s7055_s3 + $0x134] ss:$8 sps:$4 sm:$0xff]   ;;  %v5388_v55 = vld [vmem:[%s7055_s3 + $0x130] ss:$8 sps:$4 sm:$0xff]  }
 0x1d2   :  { %v812_v59 = vrot.slane %v811_v57, 2  ;;  %v824_v60 = vadd.f32 %v823_v58, %v822_v56  ;;  %v5393_v56 = vld [vmem:[%s7055_s3 + $0xa4] ss:$8 sps:$4 sm:$0xff]   ;;  %v5391_v58 = vld [vmem:[%s7055_s3 + $0xa0] ss:$8 sps:$4 sm:$0xff]  }
 0x1d3   :  { %1337 = vmatpush1.bf16.msra.mxu0 %v5376_v42 }
 0x1d4   :  { %v813_v61 = vadd.f32 %v812_v59, %v811_v57  ;;  %v825_v62 = vrot.slane %v824_v60, 2  ;;  %1338 = vmatprep.subr.bf16.mxu0 %v5384_v44  ;;  %v5396_v57 = vld [vmem:[%s7055_s3 + $0x124] ss:$8 sps:$4 sm:$0xff]   ;;  %v5394_v59 = vld [vmem:[%s7055_s3 + $0x120] ss:$8 sps:$4 sm:$0xff]  }
 0x1d6   :  { %v814_v63 = vrot.slane %v813_v61, 1  ;;  %v826_v0 = vadd.f32 %v825_v62, %v824_v60  ;;  %v5399_v60 = vld [vmem:[%s7055_s3 + $0x94] ss:$8 sps:$4 sm:$0xff]   ;;  %v5397_v62 = vld [vmem:[%s7055_s3 + $0x90] ss:$8 sps:$4 sm:$0xff]  }
 0x1d7   :  { %1339 = vmatpush1.bf16.msra.mxu0 %v5382_v49 }
 0x1d8   :  { %v827_v1 = vrot.slane %v826_v0, 1  ;;  %v815_v2 = vadd.f32 %v814_v63, %v813_v61  ;;  %1340 = vmatprep.subr.bf16.mxu0 %v5390_v51  ;;  %v5402_v61 = vld [vmem:[%s7055_s3 + $0x114] ss:$8 sps:$4 sm:$0xff]   ;;  %v5400_v63 = vld [vmem:[%s7055_s3 + $0x110] ss:$8 sps:$4 sm:$0xff]  }
 0x1da   :  { %v828_v4 = vadd.f32 %v827_v1, %v826_v0  ;;  %v5405_v0 = vld [vmem:[%s7055_s3 + $0x84] ss:$8 sps:$4 sm:$0xff]  }
 0x1db   :  { %1341 = vmatpush1.bf16.msra.mxu0 %v5388_v55  ;;  %v5408_v1 = vld [vmem:[%s7055_s3 + $0x104] ss:$8 sps:$4 sm:$0xff]  }
 0x1dc   :  { %v830_v8 = vsel %vm829_vm4, %v815_v2, %v828_v4  ;;  %1342 = vmatprep.subr.bf16.mxu0 %v5396_v57  ;;  %v5403_v2 = vld [vmem:[%s7055_s3 + $0x80] ss:$8 sps:$4 sm:$0xff]  }
 0x1dd   :  { %5293 = vmatmul.mubr.f32.vlgmr.msra.gmra.mxu1 %v830_v8  ;;  %v5406_v4 = vld [vmem:[%s7055_s3 + $0x100] ss:$8 sps:$4 sm:$0xff]  }
 0x1de   :  { %1280 = vmatpush1.bf16.msra.mxu1 %v5337_v5 }
 0x1df   :  { %1281 = vmatprep.subr.bf16.mxu1 %v5342_v7  ;;  %1343 = vmatpush1.bf16.msra.mxu0 %v5394_v59 }
 0x1e0   :  { %1344 = vmatprep.subr.bf16.mxu0 %v5402_v61 }
 0x1e2   :  { %1282 = vmatpush1.bf16.msra.mxu1 %v5340_v9 }
 0x1e3   :  { %1283 = vmatprep.subr.bf16.mxu1 %v5345_v10  ;;  %1345 = vmatpush1.bf16.msra.mxu0 %v5400_v63 }
 0x1e4   :  { %1346 = vmatprep.subr.bf16.mxu0 %v5408_v1 }
 0x1e6   :  { %1284 = vmatpush1.bf16.msra.mxu1 %v5343_v11 }
 0x1e7   :  { %1285 = vmatprep.subr.bf16.mxu1 %v5348_v12  ;;  %1347 = vmatpush1.bf16.msra.mxu0 %v5406_v4 }
 0x1ea   :  { %1286 = vmatpush1.bf16.msra.mxu1 %v5346_v13 }
 0x1eb   :  { %1287 = vmatprep.subr.bf16.mxu1 %v5351_v14  ;;  %v935_v14 = vsub.s32 1, %v6539_v15 }
 0x1ee   :  { %1288 = vmatpush1.bf16.msra.mxu1 %v5349_v16 }
 0x1ef   :  { %1289 = vmatprep.subr.bf16.mxu1 %v5354_v17 }
 0x1f2   :  { %1290 = vmatpush1.bf16.msra.mxu1 %v5352_v18 }
 0x1f3   :  { %1291 = vmatprep.subr.bf16.mxu1 %v5357_v19 }
 0x1f6   :  { %1292 = vmatpush1.bf16.msra.mxu1 %v5355_v20  ;;  %v943_v20 = vsub.s32 2, %v6539_v15 }
 0x1f7   :  { %1293 = vmatprep.subr.bf16.mxu1 %v5360_v21 }
 0x1fa   :  { %1294 = vmatpush1.bf16.msra.mxu1 %v5358_v22 }
 0x1fb   :  { %1295 = vmatprep.subr.bf16.mxu1 %v5363_v23 }
 0x1fe   :  { %1296 = vmatpush2.bf16.msra.mxu1 %v5361_v26 }
 0x1ff   :  { %1297 = vmatprep.subr.bf16.mxu1 %v5369_v28 }
 0x202   :  { %1298 = vmatpush2.bf16.msra.mxu1 %v5367_v36 }
 0x203   :  { %1299 = vmatprep.subr.bf16.mxu1 %v5375_v39 }
 0x206   :  { %1300 = vmatpush2.bf16.msra.mxu1 %v5373_v41 }
 0x207   :  { %1301 = vmatprep.subr.bf16.mxu1 %v5381_v43 }
 0x20a   :  { %1302 = vmatpush2.bf16.msra.mxu1 %v5379_v45 }
 0x20b   :  { %1303 = vmatprep.subr.bf16.mxu1 %v5387_v50 }
 0x20e   :  { %1304 = vmatpush2.bf16.msra.mxu1 %v5385_v54 }
 0x20f   :  { %1305 = vmatprep.subr.bf16.mxu1 %v5393_v56 }
 0x212   :  { %1306 = vmatpush2.bf16.msra.mxu1 %v5391_v58 }
 0x213   :  { %1307 = vmatprep.subr.bf16.mxu1 %v5399_v60 }
 0x216   :  { %1308 = vmatpush2.bf16.msra.mxu1 %v5397_v62 }
 0x217   :  { %1309 = vmatprep.subr.bf16.mxu1 %v5405_v0 }
 0x21a   :  { %1310 = vmatpush2.bf16.msra.mxu1 %v5403_v2 }
 0x29d   :  { %v913_v5 = vpop.f32.mrf.mxu1 }
 0x29e   :  { %v917_v7 = vmul.f32 %v913_v5, %v913_v5 }
 0x29f   :  { %v5294_v8 = vpop.f32.mrf.mxu1 }
 0x2a0   :  { %v919_v9 = vrot.slane %v917_v7, 7  ;;  %v1033_v8 = vsub.s32 3, %v6539_v15 }
 0x2a2   :  { %v921_v10 = vsub.f32 %v913_v5, %v919_v9  ;;  %v586_v9 = vld [vmem:[%s7058_s6 + $0x8] sm:$0xff] }
 0x2a4   :  { %v922_v11 = vadd.f32 1e-05, %v921_v10  ;;  %v5697_v10 = vmov 1935823168  }
 0x2a6   :  { %5409 = vrsqrt.f32 %v922_v11  ;;  %v1038_v11 = vrot.slane %v586_v9, %v1033_v8 }
 0x2b3   :  { %v5410_v12 = vpop.eup %5409 }
 0x2b4   :  { %v924_v13 = vmul.f32 %v5410_v12, %v6728_v24 }
 0x2b6   :  { %v926_v16 = vrot.slane %v924_v13, 1  ;;  %v936_v18 = vrot.slane %v924_v13, %v935_v14 }
 0x2b8   :  { %v928_v17 = vmul.f32 %v926_v16, %v913_v5  ;;  %v939_v22 = vmul.f32 %v936_v18, %v6737_v38  ;;  %v940_v23 = vmul.f32 %v936_v18, %v6746_v46  ;;  %v937_v26 = vmul.f32 %v936_v18, %v6733_v33 }
 0x2b9   :  { %v938_v27 = vmul.f32 %v936_v18, %v6731_v31 }
 0x2ba   :  { %v930_v19 = vrot.slane %v928_v17, 6 }
 0x2bc   :  { %v932_v21 = vsub.f32 %v6728_v24, %v930_v19 }
 0x2be   :  { %v944_v25 = vrot.slane %v932_v21, %v943_v20 }
 0x2c0   :  { %v947_v28 = vadd.f32 %v944_v25, %v939_v22  ;;  %v948_v32 = vadd.f32 %v944_v25, %v940_v23  ;;  %v945_v36 = vadd.f32 %v944_v25, %v937_v26  ;;  %v946_v37 = vadd.f32 %v944_v25, %v938_v27 }
 0x2c2   :  { %v951_v39 = vmax.f32 %v947_v28, 0.0  ;;  %v952_v40 = vmax.f32 %v948_v32, 0.0  ;;  %v949_v41 = vmax.f32 %v945_v36, 0.0  ;;  %v950_v42 = vmax.f32 %v946_v37, 0.0 }
 0x2c4   :  { %v953_v43 = vrot.slane %v949_v41, 7  ;;  %v954_v44 = vrot.slane %v950_v42, 7  ;;  %v965_v45 = vrot.slane %v949_v41, 1  ;;  %v966_v49 = vrot.slane %v950_v42, 1 }
 0x2c5   :  { %v978_v38 = vpack.c.bf16 %v950_v42, %v949_v41  ;;  %v956_v50 = vrot.slane %v952_v40, 7  ;;  %v967_v46 = vrot.slane %v951_v39, 1  ;;  %v955_v51 = vrot.slane %v951_v39, 7 }
 0x2c6   :  { %v959_v33 = vsel %vm605_vm1, %v953_v43, %v954_v44  ;;  %v971_v31 = vsel %vm618_vm0, %v965_v45, %v966_v49  ;;  %v968_v54 = vrot.slane %v952_v40, 1  ;;  %v981_v63 = vpack.c.bf16 %v952_v40, %v951_v39 }
 0x2c7   :  { %1311 = vmatprep.mubr.bf16.mxu1 %v978_v38  ;;  %v960_v55 = vsel %vm605_vm1, %v956_v50, %v953_v43  ;;  %v962_v56 = vmul.f32 %v959_v33, %v6633_v48  ;;  %v970_v57 = vsel %vm618_vm0, %v966_v49, %v967_v46  ;;  %v973_v58 = vmul.f32 %v971_v31, %v6571_v29 }
 0x2c8   :  { %v961_v59 = vmul.f32 %v960_v55, %v6628_v47  ;;  %v974_v60 = vmul.f32 %v970_v57, %v6576_v30  ;;  %v957_v0 = vsel %vm605_vm1, %v955_v51, %v956_v50  ;;  %v958_v1 = vsel %vm605_vm1, %v954_v44, %v955_v51 }
 0x2c9   :  { %v969_v48 = vsel %vm618_vm0, %v967_v46, %v968_v54  ;;  %v972_v2 = vsel %vm618_vm0, %v968_v54, %v965_v45  ;;  %v963_v29 = vmul.f32 %v958_v1, %v6640_v52  ;;  %v964_v30 = vmul.f32 %v957_v0, %v6645_v53 }
 0x2ca   :  { %v977_v61 = vpack.c.bf16 %v962_v56, %v961_v59  ;;  %v979_v62 = vpack.c.bf16 %v974_v60, %v973_v58  ;;  %v975_v47 = vmul.f32 %v969_v48, %v6586_v34  ;;  %v976_v4 = vmul.f32 %v972_v2, %v6591_v35 }
 0x2cb   :  { %v980_v5 = vpack.c.bf16 %v964_v30, %v963_v29  ;;  %v1418_v52 = vunpack.c.l.s4 %v5697_v10 }
 0x2cc   :  { %1312 = vmatmul.mubr.bf16.vlgmr.msra.gmra.mxu1 %v977_v61  ;;  %1365 = vmatmul.mubr.bf16.vlgmr.msra.gmra.mxu0 %v979_v62  ;;  %v982_v7 = vpack.c.bf16 %v976_v4, %v975_v47 }
 0x2cd   :  { %1321 = vmatprep.mubr.bf16.mxu1 %v981_v63  ;;  %1374 = vmatprep.mubr.bf16.mxu0 %v5693_v6  ;;  %v1034_v6 = vrot.slane %v6728_v24, %v1033_v8  ;;  %v1419_v14 = vunpack.c.0.s8 %v1418_v52 }
 0x2cf   :  { %v1422_v22 = vsub.s32 %v1419_v14, %v6539_v15 }
 0x2d4   :  { %1322 = vmatmul.mubr.bf16.gmra.mxu1 %v980_v5  ;;  %1375 = vmatmul.mubr.bf16.gmra.mxu0 %v982_v7 }
 0x38c   :  { %v1313_v53 = vpop.f32.mrf.mxu1  ;;  %v1366_v12 = vpop.f32.mrf.mxu0 }
 0x38d   :  { %v1314_v34 = vadd.f32 %v1313_v53, %v1034_v6 }
 0x38e   :  { %v1315_v13 = vpop.f32.mrf.mxu1  ;;  %v1368_v35 = vpop.f32.mrf.mxu0 }
 0x38f   :  { %v1367_v16 = vadd.f32 %v1366_v12, %v1314_v34  ;;  %v1316_v17 = vadd.f32 %v1315_v13, %v1038_v11 }
 0x390   :  { %v1317_v18 = vpop.f32.mrf.mxu1  ;;  %v1370_v19 = vpop.f32.mrf.mxu0 }
 0x391   :  { %v1369_v20 = vadd.f32 %v1368_v35, %v1316_v17  ;;  %v1318_v21 = vadd.f32 %v1317_v18, %v1034_v6  ;;  %v1385_v26 = vmax.f32 %v1367_v16, 0.0 }
 0x392   :  { %v1319_v23 = vpop.f32.mrf.mxu1  ;;  %v1372_v25 = vpop.f32.mrf.mxu0 }
 0x393   :  { %v1386_v27 = vmax.f32 %v1369_v20, 0.0  ;;  %v1371_v28 = vadd.f32 %v1370_v19, %v1318_v21  ;;  %v1320_v32 = vadd.f32 %v1319_v23, %v1038_v11 }
 0x394   :  { %v1323_v36 = vpop.f32.mrf.mxu1  ;;  %v1376_v37 = vpop.f32.mrf.mxu0 }
 0x395   :  { %v1401_v39 = vcombine.low %v1385_v26, %v1386_v27  ;;  %v1402_v40 = vcombine.high %v1385_v26, %v1386_v27  ;;  %v1373_v41 = vadd.f32 %v1372_v25, %v1320_v32  ;;  %v1387_v42 = vmax.f32 %v1371_v28, 0.0 }
 0x396   :  { %v1324_v43 = vadd.f32 %v1323_v36, %v1034_v6  ;;  %v1325_v44 = vpop.f32.mrf.mxu1  ;;  %v1378_v45 = vpop.f32.mrf.mxu0 }
 0x397   :  { %v6931_v49 = vrot.slane %v1401_v39, %v1422_v22  ;;  %v6933_v38 = vrot.slane %v1402_v40, %v1422_v22  ;;  %v1388_v50 = vmax.f32 %v1373_v41, 0.0  ;;  %v1326_v46 = vadd.f32 %v1325_v44, %v1038_v11 }
 0x398   :  { %v1377_v33 = vadd.f32 %v1376_v37, %v1324_v43  ;;  %v1327_v31 = vpop.f32.mrf.mxu1  ;;  %v1380_v57 = vpop.f32.mrf.mxu0 }
 0x399   :  { %v1403_v51 = vcombine.low %v1387_v42, %v1388_v50  ;;  %v1404_v54 = vcombine.high %v1387_v42, %v1388_v50  ;;  %v1379_v55 = vadd.f32 %v1378_v45, %v1326_v46  ;;  %v1328_v56 = vadd.f32 %v1327_v31, %v1034_v6 }
 0x39a   :  { %v1329_v58 = vpop.f32.mrf.mxu1  ;;  %v1389_v61 = vmax.f32 %v1377_v33, 0.0  ;;  %v1382_v2 = vpop.f32.mrf.mxu0 }
 0x39b   :  { %v6935_v59 = vrot.slane %v1403_v51, %v1422_v22  ;;  %v6937_v60 = vrot.slane %v1404_v54, %v1422_v22  ;;  %v1390_v62 = vmax.f32 %v1379_v55, 0.0  ;;  %v1381_v63 = vadd.f32 %v1380_v57, %v1328_v56 }
 0x39c   :  { %v1330_v0 = vadd.f32 %v1329_v58, %v1038_v11 }
 0x39d   :  { %v1405_v1 = vcombine.low %v1389_v61, %v1390_v62  ;;  %v1406_v48 = vcombine.high %v1389_v61, %v1390_v62  ;;  %v1391_v4 = vmax.f32 %v1381_v63, 0.0 }
 0x39e   :  { %v1383_v29 = vadd.f32 %v1382_v2, %v1330_v0 }
 0x39f   :  { %v1451_v30 = vrot.slane %v1405_v1, %v1422_v22  ;;  %v6939_v47 = vrot.slane %v1406_v48, %v1422_v22 }
 0x3a0   :  { %v1392_v5 = vmax.f32 %v1383_v29, 0.0 }
 0x3a2   :  { %v1407_v7 = vcombine.low %v1391_v4, %v1392_v5  ;;  %v1408_v8 = vcombine.high %v1391_v4, %v1392_v5 }
 0x3a4   :  { %v6941_v9 = vrot.slane %v1407_v7, %v1422_v22  ;;  %v6943_v6 = vrot.slane %v1408_v8, %v1422_v22 }
 0x3a5   :  { %5689 = dma.done.wait [#allocation3], 32768 }
 0x3a6   :  { %5690 = vsyncadd [#allocation3], 4294934528  ;;  %v5698_v10 = vmov 1966171168   ;;  %v1485_v11 = vcombine.low %v6931_v49, %v1451_v30  ;;  %v5411_v34 = vld [vmem:[#allocation2 + $0x78] sm:$0xff]   ;;  %v5415_v18 = vld [vmem:[#allocation2 + $0x70] sm:$0xff]   ;;  %v1486_v41 = vcombine.high %v6931_v49, %v1451_v30 }
 0x3a7   :  { %v1488_v52 = vunpack.c.l.s4 %v5698_v10  ;;  %v5412_v35 = vld [vmem:[#allocation2 + $0xf8] sm:$0xff]   ;;  %4903 = vmatprep.subr.bf16.mxu0 %v5411_v34  ;;  %v5416_v20 = vld [vmem:[#allocation2 + $0xf0] sm:$0xff]   ;;  %v5419_v26 = vld [vmem:[#allocation2 + $0x68] sm:$0xff]   ;;  %s5699_s21 = smov 32   ;;  %s5700_s7 = smov 96   ;;  %vm4463_vm5 = vcmask 261120  }
 0x3a8   :  { %v5413_v14 = vld [vmem:[#allocation2 + $0x38] sm:$0xff]   ;;  %4925 = vmatprep.subr.bf16.mxu1 %v5412_v35  ;;  %v5417_v21 = vld [vmem:[#allocation2 + $0x30] sm:$0xff]   ;;  %v5420_v28 = vld [vmem:[#allocation2 + $0xe8] sm:$0xff]   ;;  %s5701_s28 = smov [#allocation4]  }
 0x3a9   :  { %v1489_v53 = vunpack.c.0.s8 %v1488_v52  ;;  %v5414_v17 = vld [vmem:[#allocation2 + $0xb8] sm:$0xff]   ;;  %4904 = vmatpush3.bf16.msra.mxu0 %v5413_v14  ;;  %v5418_v25 = vld [vmem:[#allocation2 + $0xb0] sm:$0xff]   ;;  %v5421_v32 = vld [vmem:[#allocation2 + $0x28] sm:$0xff]   ;;  %s4544_s0 = sshll.u32 %s5701_s28, 4  ;;  %s4545_s0 = int_to_ptr.vmem [resolvable:$true] %s4544_s0 }
 0x3aa   :  { %4926 = vmatpush3.bf16.msra.mxu1 %v5414_v17  ;;  %4905 = vmatprep.subr.bf16.mxu0 %v5415_v18  ;;  %v5422_v36 = vld [vmem:[#allocation2 + $0xa8] sm:$0xff]   ;;  %v5423_v37 = vld [vmem:[#allocation2 + $0x60] sm:$0xff]   ;;  %v5427_v43 = vld [vmem:[#allocation2 + $0x58] sm:$0xff]   ;;  %p5674_p1 = scmp.lt.s32.totalorder %s4545_s0, %s4545_s0 }
 0x3ab   :  { %v6947_v12 = vsub.s32 %v1489_v53, %v6539_v15  ;;  %4927 = vmatprep.subr.bf16.mxu1 %v5416_v20  ;;  %v5424_v39 = vld [vmem:[#allocation2 + $0xe0] sm:$0xff]   ;;  %v5428_v44 = vld [vmem:[#allocation2 + $0xd8] sm:$0xff]   ;;  %v5431_v33 = vld [vmem:[#allocation2 + $0x50] sm:$0xff]  }
 0x3ac   :  { %v5425_v40 = vld [vmem:[#allocation2 + $0x20] sm:$0xff]   ;;  %v5429_v45 = vld [vmem:[#allocation2 + $0x18] sm:$0xff]   ;;  %v5432_v31 = vld [vmem:[#allocation2 + $0xd0] sm:$0xff]  }
 0x3ad   :  { %v1493_v13 = vrot.slane %v1485_v11, %v6947_v12  ;;  %4906 = vmatpush3.bf16.msra.mxu0 %v5417_v21  ;;  %v5426_v42 = vld [vmem:[#allocation2 + $0xa0] sm:$0xff]   ;;  %v6953_v50 = vrot.slane %v1486_v41, %v6947_v12  ;;  %v5430_v46 = vld [vmem:[#allocation2 + $0x98] sm:$0xff]   ;;  %v5433_v51 = vld [vmem:[#allocation2 + $0x10] sm:$0xff]  }
 0x3ae   :  { %4928 = vmatpush3.bf16.msra.mxu1 %v5418_v25  ;;  %4907 = vmatprep.subr.bf16.mxu0 %v5419_v26  ;;  %v5434_v54 = vld [vmem:[#allocation2 + $0x90] sm:$0xff]   ;;  %v5435_v55 = vld [vmem:[#allocation2 + $0x48] sm:$0xff]   ;;  %v5439_v63 = vld [vmem:[#allocation2 + $0x40] sm:$0xff]  }
 0x3af   :  { %v1501_v16 = vcombine.high %v1493_v13, %v1493_v13  ;;  %4929 = vmatprep.subr.bf16.mxu1 %v5420_v28  ;;  %v1502_v49 = vcombine.high %v6953_v50, %v6953_v50  ;;  %v1509_v56 = vrot.slane %v1493_v13, %v6947_v12  ;;  %v5436_v57 = vld [vmem:[#allocation2 + $0xc8] sm:$0xff]   ;;  %v5440_v1 = vld [vmem:[#allocation2 + $0xc0] sm:$0xff]   ;;  %v5443_v5 = vld [vmem:[#allocation2 + $0x178] sm:$0xff]  }
 0x3b0   :  { %v5437_v58 = vld [vmem:[#allocation2 + $0x8] sm:$0xff]   ;;  %v5441_v48 = vld [vmem:[#allocation2] sm:$0xff]   ;;  %v5444_v7 = vld [vmem:[#allocation2 + $0x1f8] sm:$0xff]  }
 0x3b1   :  { %v1523_v19 = vrot.slane %v1501_v16, %v6947_v12  ;;  %4908 = vmatpush3.bf16.msra.mxu0 %v5421_v32  ;;  %v1530_v61 = vrot.slane %v1502_v49, %v6947_v12  ;;  %v5438_v62 = vld [vmem:[#allocation2 + $0x88] sm:$0xff]   ;;  %v1531_v0 = vcombine.high %v1509_v56, %v1509_v56  ;;  %v5442_v29 = vld [vmem:[#allocation2 + $0x80] sm:$0xff]   ;;  %v1717_v30 = vpack.c.bf16 %v1509_v56, %v1509_v56  ;;  %v5445_v10 = vld [vmem:[#allocation2 + $0x138] sm:$0xff]  }
 0x3b2   :  { %4930 = vmatpush3.bf16.msra.mxu1 %v5422_v36  ;;  %4909 = vmatprep.subr.bf16.mxu0 %v5423_v37  ;;  %v5446_v11 = vld [vmem:[#allocation2 + $0x1b8] sm:$0xff]   ;;  %v5447_v53 = vld [vmem:[#allocation2 + $0x170] sm:$0xff]   ;;  %v5451_v14 = vld [vmem:[#allocation2 + $0x168] sm:$0xff]  }
 0x3b3   :  { %v1718_v22 = vpack.c.bf16 %v1523_v19, %v1523_v19  ;;  %v1533_v23 = vcombine.high %v1523_v19, %v1523_v19  ;;  %4931 = vmatprep.subr.bf16.mxu1 %v5424_v39  ;;  %v1534_v2 = vcombine.high %v1530_v61, %v1530_v61  ;;  %v1719_v4 = vpack.c.bf16 %v1531_v0, %v1531_v0  ;;  %v5448_v34 = vld [vmem:[#allocation2 + $0x1f0] sm:$0xff]   ;;  %v5452_v16 = vld [vmem:[#allocation2 + $0x1e8] sm:$0xff]   ;;  %v5455_v19 = vld [vmem:[#allocation2 + $0x160] sm:$0xff]  }
 0x3b4   :  { %v1722_v8 = vpack.c.bf16 %v1530_v61, %v1530_v61  ;;  %v5449_v13 = vld [vmem:[#allocation2 + $0x130] sm:$0xff]   ;;  %v5453_v17 = vld [vmem:[#allocation2 + $0x128] sm:$0xff]   ;;  %v5456_v20 = vld [vmem:[#allocation2 + $0x1e0] sm:$0xff]  }
 0x3b5   :  { %3833 = vmatprep.mubr.bf16.mxu0 %v1718_v22  ;;  %v1720_v27 = vpack.c.bf16 %v1533_v23, %v1533_v23  ;;  %4910 = vmatpush3.bf16.msra.mxu0 %v5425_v40  ;;  %v1724_v52 = vpack.c.bf16 %v1534_v2, %v1534_v2  ;;  %v5450_v35 = vld [vmem:[#allocation2 + $0x1b0] sm:$0xff]   ;;  %v5454_v18 = vld [vmem:[#allocation2 + $0x1a8] sm:$0xff]   ;;  %v5457_v21 = vld [vmem:[#allocation2 + $0x120] sm:$0xff]   ;;  %v1535_v22 = vcombine.low %v6933_v38, %v6939_v47 }
 0x3b6   :  { %4932 = vmatpush3.bf16.msra.mxu1 %v5426_v42  ;;  %4911 = vmatprep.subr.bf16.mxu0 %v5427_v43  ;;  %v5458_v23 = vld [vmem:[#allocation2 + $0x1a0] sm:$0xff]   ;;  %v5459_v25 = vld [vmem:[#allocation2 + $0x158] sm:$0xff]   ;;  %v5463_v36 = vld [vmem:[#allocation2 + $0x150] sm:$0xff]   ;;  %v1516_v43 = vrot.slane %v6953_v50, %v6947_v12 }
 0x3b7   :  { %3873 = vmatprep.mubr.bf16.mxu1 %v1720_v27  ;;  %4933 = vmatprep.subr.bf16.mxu1 %v5428_v44  ;;  %v5460_v26 = vld [vmem:[#allocation2 + $0x1d8] sm:$0xff]   ;;  %v6962_v28 = vrot.slane %v1535_v22, %v6947_v12  ;;  %v5464_v37 = vld [vmem:[#allocation2 + $0x1d0] sm:$0xff]   ;;  %v5467_v42 = vld [vmem:[#allocation2 + $0x148] sm:$0xff]  }
 0x3b8   :  { %v5461_v27 = vld [vmem:[#allocation2 + $0x118] sm:$0xff]   ;;  %v5465_v39 = vld [vmem:[#allocation2 + $0x110] sm:$0xff]   ;;  %v5468_v44 = vld [vmem:[#allocation2 + $0x1c8] sm:$0xff]  }
 0x3b9   :  { %4912 = vmatpush3.bf16.msra.mxu0 %v5429_v45  ;;  %v5462_v32 = vld [vmem:[#allocation2 + $0x198] sm:$0xff]   ;;  %v1551_v40 = vcombine.high %v6962_v28, %v6962_v28  ;;  %v5466_v41 = vld [vmem:[#allocation2 + $0x190] sm:$0xff]   ;;  %v5469_v45 = vld [vmem:[#allocation2 + $0x108] sm:$0xff]   ;;  %v1559_v22 = vrot.slane %v6962_v28, %v6947_v12 }
 0x3ba   :  { %4934 = vmatpush3.bf16.msra.mxu1 %v5430_v46  ;;  %4913 = vmatprep.subr.bf16.mxu0 %v5431_v33  ;;  %v5470_v33 = vld [vmem:[#allocation2 + $0x188] sm:$0xff]   ;;  %v5472_v49 = vld [vmem:[#allocation2 + $0x1c0] sm:$0xff]   ;;  %v5476_v61 = vld [vmem:[#allocation2 + $0x2f8] sm:$0xff]  }
 0x3bb   :  { %4935 = vmatprep.subr.bf16.mxu1 %v5432_v31  ;;  %v1573_v46 = vrot.slane %v1551_v40, %v6947_v12  ;;  %v5471_v31 = vld [vmem:[#allocation2 + $0x140] sm:$0xff]   ;;  %v5480_v2 = vld [vmem:[#allocation2 + $0x2f0] sm:$0xff]  }
 0x3bc   :  { %v5474_v56 = vld [vmem:[#allocation2 + $0x180] sm:$0xff]  }
 0x3bd   :  { %4914 = vmatpush3.bf16.msra.mxu0 %v5433_v51  ;;  %v1532_v51 = vcombine.high %v1516_v43, %v1516_v43 }
 0x3be   :  { %4936 = vmatpush3.bf16.msra.mxu1 %v5434_v54  ;;  %4915 = vmatprep.subr.bf16.mxu0 %v5435_v55  ;;  %v5473_v54 = vld [vmem:[#allocation2 + $0x100] sm:$0xff]   ;;  %v1583_v55 = vcombine.high %v1573_v46, %v1573_v46 }
 0x3bf   :  { %4937 = vmatprep.subr.bf16.mxu1 %v5436_v57  ;;  %v1721_v57 = vpack.c.bf16 %v1516_v43, %v1516_v43  ;;  %v1723_v50 = vpack.c.bf16 %v1532_v51, %v1532_v51  ;;  %v5507_v43 = vld [vmem:[#allocation2 + $0x378] sm:$0xff]   ;;  %v5511_v51 = vld [vmem:[#allocation2 + $0x370] sm:$0xff]  }
 0x3c0   :  { %v1728_v0 = vpack.c.bf16 %v1583_v55, %v1583_v55  ;;  %v5514_v55 = vld [vmem:[#allocation2 + $0x3b0] sm:$0xff]  }
 0x3c1   :  { %4916 = vmatpush3.bf16.msra.mxu0 %v5437_v58  ;;  %v5475_v58 = vld [vmem:[#allocation2 + $0x278] sm:$0xff]  }
 0x3c2   :  { %4938 = vmatpush3.bf16.msra.mxu1 %v5438_v62  ;;  %4917 = vmatprep.subr.bf16.mxu0 %v5439_v63  ;;  %v1726_v62 = vpack.c.bf16 %v1573_v46, %v1573_v46  ;;  %v5477_v63 = vld [vmem:[#allocation2 + $0x238] sm:$0xff]  }
 0x3c3   :  { %4939 = vmatprep.subr.bf16.mxu1 %v5440_v1  ;;  %v5478_v1 = vld [vmem:[#allocation2 + $0x2b8] sm:$0xff]  }
 0x3c4   :  { %v5509_v46 = vld [vmem:[#allocation2 + $0x338] sm:$0xff]  }
 0x3c5   :  { %4918 = vmatpush3.bf16.msra.mxu0 %v5441_v48  ;;  %v5479_v48 = vld [vmem:[#allocation2 + $0x270] sm:$0xff]  }
 0x3c6   :  { %4940 = vmatpush3.bf16.msra.mxu1 %v5442_v29  ;;  %4947 = vmatprep.subr.bf16.mxu0 %v5443_v5  ;;  %v5481_v29 = vld [vmem:[#allocation2 + $0x230] sm:$0xff]   ;;  %v5484_v5 = vld [vmem:[#allocation2 + $0x2e8] sm:$0xff]  }
 0x3c7   :  { %4969 = vmatprep.subr.bf16.mxu1 %v5444_v7  ;;  %v5485_v7 = vld [vmem:[#allocation2 + $0x228] sm:$0xff]  }
 0x3c8   :  { %3834 = vmatmul.mubr.bf16.vlgmr.msra.gmra.mxu0 %v1717_v30  ;;  %v5482_v30 = vld [vmem:[#allocation2 + $0x2b0] sm:$0xff]  }
 0x3c9   :  { %3874 = vmatmul.mubr.bf16.vlgmr.msra.gmra.mxu1 %v1719_v4  ;;  %4948 = vmatpush3.bf16.msra.mxu0 %v5445_v10  ;;  %v5483_v4 = vld [vmem:[#allocation2 + $0x268] sm:$0xff]   ;;  %v5487_v10 = vld [vmem:[#allocation2 + $0x260] sm:$0xff]  }
 0x3ca   :  { %4970 = vmatpush3.bf16.msra.mxu1 %v5446_v11  ;;  %3913 = vmatprep.mubr.bf16.mxu0 %v1722_v8  ;;  %v5486_v8 = vld [vmem:[#allocation2 + $0x2a8] sm:$0xff]   ;;  %v5489_v11 = vld [vmem:[#allocation2 + $0x220] sm:$0xff]  }
 0x3cb   :  { %4949 = vmatprep.subr.bf16.mxu0 %v5447_v53  ;;  %3953 = vmatprep.mubr.bf16.mxu1 %v1724_v52  ;;  %v5488_v52 = vld [vmem:[#allocation2 + $0x2e0] sm:$0xff]   ;;  %v1536_v53 = vcombine.high %v6933_v38, %v6939_v47  ;;  %v5498_v47 = vld [vmem:[#allocation2 + $0x290] sm:$0xff]  }
 0x3cc   :  { %4971 = vmatprep.subr.bf16.mxu1 %v5448_v34  ;;  %v5490_v34 = vld [vmem:[#allocation2 + $0x2a0] sm:$0xff]  }
 0x3cd   :  { %4950 = vmatpush3.bf16.msra.mxu0 %v5449_v13  ;;  %v5491_v13 = vld [vmem:[#allocation2 + $0x258] sm:$0xff]  }
 0x3ce   :  { %4972 = vmatpush3.bf16.msra.mxu1 %v5450_v35  ;;  %4951 = vmatprep.subr.bf16.mxu0 %v5451_v14  ;;  %v5492_v35 = vld [vmem:[#allocation2 + $0x2d8] sm:$0xff]  }
 0x3cf   :  { %4973 = vmatprep.subr.bf16.mxu1 %v5452_v16  ;;  %v5493_v14 = vld [vmem:[#allocation2 + $0x218] sm:$0xff]   ;;  %v6972_v16 = vrot.slane %v1536_v53, %v6947_v12 }
 0x3d1   :  { %4952 = vmatpush3.bf16.msra.mxu0 %v5453_v17  ;;  %v5494_v17 = vld [vmem:[#allocation2 + $0x298] sm:$0xff]   ;;  %v1552_v38 = vcombine.high %v6972_v16, %v6972_v16  ;;  %v1566_v53 = vrot.slane %v6972_v16, %v6947_v12 }
 0x3d2   :  { %4974 = vmatpush3.bf16.msra.mxu1 %v5454_v18  ;;  %4953 = vmatprep.subr.bf16.mxu0 %v5455_v19  ;;  %v5495_v18 = vld [vmem:[#allocation2 + $0x250] sm:$0xff]  }
 0x3d3   :  { %4975 = vmatprep.subr.bf16.mxu1 %v5456_v20  ;;  %v5496_v19 = vld [vmem:[#allocation2 + $0x2d0] sm:$0xff]  }
 0x3d4   :  { %v5497_v20 = vld [vmem:[#allocation2 + $0x210] sm:$0xff]  }
 0x3d5   :  { %4954 = vmatpush3.bf16.msra.mxu0 %v5457_v21  ;;  %v5499_v21 = vld [vmem:[#allocation2 + $0x248] sm:$0xff]  }
 0x3d6   :  { %4976 = vmatpush3.bf16.msra.mxu1 %v5458_v23  ;;  %4955 = vmatprep.subr.bf16.mxu0 %v5459_v25  ;;  %v5500_v23 = vld [vmem:[#allocation2 + $0x2c8] sm:$0xff]  }
 0x3d7   :  { %4977 = vmatprep.subr.bf16.mxu1 %v5460_v26  ;;  %v5501_v25 = vld [vmem:[#allocation2 + $0x208] sm:$0xff]   ;;  %v1580_v26 = vrot.slane %v1552_v38, %v6947_v12 }
 0x3d9   :  { %4956 = vmatpush3.bf16.msra.mxu0 %v5461_v27  ;;  %v5502_v27 = vld [vmem:[#allocation2 + $0x288] sm:$0xff]   ;;  %v1584_v40 = vcombine.high %v1580_v26, %v1580_v26 }
 0x3da   :  { %4978 = vmatpush3.bf16.msra.mxu1 %v5462_v32  ;;  %4957 = vmatprep.subr.bf16.mxu0 %v5463_v36  ;;  %v5503_v32 = vld [vmem:[#allocation2 + $0x240] sm:$0xff]   ;;  %v1581_v36 = vcombine.high %v1559_v22, %v1559_v22 }
 0x3db   :  { %4979 = vmatprep.subr.bf16.mxu1 %v5464_v37  ;;  %v5504_v37 = vld [vmem:[#allocation2 + $0x2c0] sm:$0xff]  }
 0x3dc   :  { %v1727_v28 = vpack.c.bf16 %v1581_v36, %v1581_v36  ;;  %v5543_v36 = vld [vmem:[#allocation2 + $0x470] sm:$0xff]  }
 0x3dd   :  { %4958 = vmatpush3.bf16.msra.mxu0 %v5465_v39  ;;  %v5505_v39 = vld [vmem:[#allocation2 + $0x200] sm:$0xff]  }
 0x3de   :  { %4980 = vmatpush3.bf16.msra.mxu1 %v5466_v41  ;;  %4959 = vmatprep.subr.bf16.mxu0 %v5467_v42  ;;  %v5506_v41 = vld [vmem:[#allocation2 + $0x280] sm:$0xff]   ;;  %v1725_v42 = vpack.c.bf16 %v1559_v22, %v1559_v22  ;;  %v5539_v22 = vld [vmem:[#allocation2 + $0x478] sm:$0xff]  }
 0x3df   :  { %4981 = vmatprep.subr.bf16.mxu1 %v5468_v44  ;;  %v5508_v44 = vld [vmem:[#allocation2 + $0x3f8] sm:$0xff]  }
 0x3e1   :  { %4960 = vmatpush3.bf16.msra.mxu0 %v5469_v45  ;;  %v1730_v45 = vpack.c.bf16 %v1580_v26, %v1580_v26  ;;  %v5541_v26 = vld [vmem:[#allocation2 + $0x438] sm:$0xff]  }
 0x3e2   :  { %4982 = vmatpush3.bf16.msra.mxu1 %v5470_v33  ;;  %4961 = vmatprep.subr.bf16.mxu0 %v5471_v31  ;;  %v1732_v33 = vpack.c.bf16 %v1584_v40, %v1584_v40  ;;  %v5510_v31 = vld [vmem:[#allocation2 + $0x3b8] sm:$0xff]   ;;  %v5546_v40 = vld [vmem:[#allocation2 + $0x4b0] sm:$0xff]  }
 0x3e3   :  { %4983 = vmatprep.subr.bf16.mxu1 %v5472_v49  ;;  %v5512_v49 = vld [vmem:[#allocation2 + $0x3f0] sm:$0xff]  }
 0x3e5   :  { %4962 = vmatpush3.bf16.msra.mxu0 %v5473_v54  ;;  %v5513_v54 = vld [vmem:[#allocation2 + $0x330] sm:$0xff]  }
 0x3e6   :  { %4984 = vmatpush3.bf16.msra.mxu1 %v5474_v56  ;;  %4991 = vmatprep.subr.bf16.mxu0 %v5475_v58  ;;  %v5515_v56 = vld [vmem:[#allocation2 + $0x368] sm:$0xff]  }
 0x3e7   :  { %5013 = vmatprep.subr.bf16.mxu1 %v5476_v61  ;;  %v5518_v58 = vld [vmem:[#allocation2 + $0x3a8] sm:$0xff]   ;;  %v5519_v61 = vld [vmem:[#allocation2 + $0x360] sm:$0xff]  }
 0x3e8   :  { %3914 = vmatmul.mubr.bf16.vlgmr.msra.gmra.mxu0 %v1721_v57  ;;  %v5516_v57 = vld [vmem:[#allocation2 + $0x3e8] sm:$0xff]  }
 0x3e9   :  { %3954 = vmatmul.mubr.bf16.vlgmr.msra.gmra.mxu1 %v1723_v50  ;;  %4992 = vmatpush3.bf16.msra.mxu0 %v5477_v63  ;;  %v5517_v50 = vld [vmem:[#allocation2 + $0x328] sm:$0xff]   ;;  %v5521_v63 = vld [vmem:[#allocation2 + $0x320] sm:$0xff]  }
 0x3ea   :  { %5014 = vmatpush3.bf16.msra.mxu1 %v5478_v1  ;;  %3993 = vmatprep.mubr.bf16.mxu0 %v1726_v62  ;;  %v5520_v62 = vld [vmem:[#allocation2 + $0x3e0] sm:$0xff]  }
 0x3eb   :  { %4993 = vmatprep.subr.bf16.mxu0 %v5479_v48  ;;  %4033 = vmatprep.mubr.bf16.mxu1 %v1728_v0  ;;  %v1585_v0 = vcombine.low %v6935_v59, %v6941_v9  ;;  %v5522_v1 = vld [vmem:[#allocation2 + $0x3a0] sm:$0xff]   ;;  %v5523_v48 = vld [vmem:[#allocation2 + $0x358] sm:$0xff]  }
 0x3ec   :  { %5015 = vmatprep.subr.bf16.mxu1 %v5480_v2  ;;  %v5524_v2 = vld [vmem:[#allocation2 + $0x3d8] sm:$0xff]  }
 0x3ed   :  { %4994 = vmatpush3.bf16.msra.mxu0 %v5481_v29  ;;  %v5525_v29 = vld [vmem:[#allocation2 + $0x318] sm:$0xff]  }
 0x3ee   :  { %5016 = vmatpush3.bf16.msra.mxu1 %v5482_v30  ;;  %4995 = vmatprep.subr.bf16.mxu0 %v5483_v4  ;;  %v6982_v30 = vrot.slane %v1585_v0, %v6947_v12  ;;  %v5526_v4 = vld [vmem:[#allocation2 + $0x398] sm:$0xff]   ;;  %v5565_v0 = vld [vmem:[#allocation2 + $0x408] sm:$0xff]  }
 0x3ef   :  { %5017 = vmatprep.subr.bf16.mxu1 %v5484_v5  ;;  %v5527_v5 = vld [vmem:[#allocation2 + $0x350] sm:$0xff]  }
 0x3f1   :  { %4996 = vmatpush3.bf16.msra.mxu0 %v5485_v7  ;;  %v5528_v7 = vld [vmem:[#allocation2 + $0x3d0] sm:$0xff]  }
 0x3f2   :  { %5018 = vmatpush3.bf16.msra.mxu1 %v5486_v8  ;;  %4997 = vmatprep.subr.bf16.mxu0 %v5487_v10  ;;  %v5529_v8 = vld [vmem:[#allocation2 + $0x310] sm:$0xff]   ;;  %v1601_v10 = vcombine.high %v6982_v30, %v6982_v30 }
 0x3f3   :  { %5019 = vmatprep.subr.bf16.mxu1 %v5488_v52  ;;  %v5530_v52 = vld [vmem:[#allocation2 + $0x390] sm:$0xff]  }
 0x3f5   :  { %4998 = vmatpush3.bf16.msra.mxu0 %v5489_v11  ;;  %v5531_v11 = vld [vmem:[#allocation2 + $0x348] sm:$0xff]  }
 0x3f6   :  { %5020 = vmatpush3.bf16.msra.mxu1 %v5490_v34  ;;  %4999 = vmatprep.subr.bf16.mxu0 %v5491_v13  ;;  %v5532_v34 = vld [vmem:[#allocation2 + $0x3c8] sm:$0xff]  }
 0x3f7   :  { %5021 = vmatprep.subr.bf16.mxu1 %v5492_v35  ;;  %v5533_v13 = vld [vmem:[#allocation2 + $0x308] sm:$0xff]   ;;  %v1623_v35 = vrot.slane %v1601_v10, %v6947_v12 }
 0x3f9   :  { %5000 = vmatpush3.bf16.msra.mxu0 %v5493_v14  ;;  %v5534_v14 = vld [vmem:[#allocation2 + $0x388] sm:$0xff]   ;;  %v1633_v38 = vcombine.high %v1623_v35, %v1623_v35 }
 0x3fa   :  { %5022 = vmatpush3.bf16.msra.mxu1 %v5494_v17  ;;  %5001 = vmatprep.subr.bf16.mxu0 %v5495_v18  ;;  %v5535_v17 = vld [vmem:[#allocation2 + $0x340] sm:$0xff]   ;;  %v1582_v18 = vcombine.high %v1566_v53, %v1566_v53 }
 0x3fb   :  { %5023 = vmatprep.subr.bf16.mxu1 %v5496_v19  ;;  %v5536_v19 = vld [vmem:[#allocation2 + $0x3c0] sm:$0xff]  }
 0x3fc   :  { %v1731_v16 = vpack.c.bf16 %v1582_v18, %v1582_v18  ;;  %v5577_v18 = vld [vmem:[#allocation2 + $0x530] sm:$0xff]  }
 0x3fd   :  { %5002 = vmatpush3.bf16.msra.mxu0 %v5497_v20  ;;  %v5537_v20 = vld [vmem:[#allocation2 + $0x300] sm:$0xff]  }
 0x3fe   :  { %5024 = vmatpush3.bf16.msra.mxu1 %v5498_v47  ;;  %5003 = vmatprep.subr.bf16.mxu0 %v5499_v21  ;;  %v5538_v47 = vld [vmem:[#allocation2 + $0x380] sm:$0xff]   ;;  %v1729_v21 = vpack.c.bf16 %v1566_v53, %v1566_v53 }
 0x3ff   :  { %5025 = vmatprep.subr.bf16.mxu1 %v5500_v23  ;;  %v5540_v23 = vld [vmem:[#allocation2 + $0x4f8] sm:$0xff]  }
 0x401   :  { %5004 = vmatpush3.bf16.msra.mxu0 %v5501_v25  ;;  %v1734_v25 = vpack.c.bf16 %v1623_v35, %v1623_v35  ;;  %v5574_v35 = vld [vmem:[#allocation2 + $0x5b8] sm:$0xff]  }
 0x402   :  { %5026 = vmatpush3.bf16.msra.mxu1 %v5502_v27  ;;  %5005 = vmatprep.subr.bf16.mxu0 %v5503_v32  ;;  %v1736_v27 = vpack.c.bf16 %v1633_v38, %v1633_v38  ;;  %v5542_v32 = vld [vmem:[#allocation2 + $0x4b8] sm:$0xff]   ;;  %v5580_v38 = vld [vmem:[#allocation2 + $0x5e8] sm:$0xff]  }
 0x403   :  { %5027 = vmatprep.subr.bf16.mxu1 %v5504_v37  ;;  %v5544_v37 = vld [vmem:[#allocation2 + $0x4f0] sm:$0xff]  }
 0x405   :  { %5006 = vmatpush3.bf16.msra.mxu0 %v5505_v39  ;;  %v5545_v39 = vld [vmem:[#allocation2 + $0x430] sm:$0xff]  }
 0x406   :  { %5028 = vmatpush3.bf16.msra.mxu1 %v5506_v41  ;;  %5035 = vmatprep.subr.bf16.mxu0 %v5507_v43  ;;  %v5547_v41 = vld [vmem:[#allocation2 + $0x468] sm:$0xff]  }
 0x407   :  { %5057 = vmatprep.subr.bf16.mxu1 %v5508_v44  ;;  %v5550_v43 = vld [vmem:[#allocation2 + $0x4a8] sm:$0xff]   ;;  %v5551_v44 = vld [vmem:[#allocation2 + $0x460] sm:$0xff]  }
 0x408   :  { %3994 = vmatmul.mubr.bf16.vlgmr.msra.gmra.mxu0 %v1725_v42  ;;  %v5548_v42 = vld [vmem:[#allocation2 + $0x4e8] sm:$0xff]  }
 0x409   :  { %4034 = vmatmul.mubr.bf16.vlgmr.msra.gmra.mxu1 %v1727_v28  ;;  %5036 = vmatpush3.bf16.msra.mxu0 %v5509_v46  ;;  %v5549_v28 = vld [vmem:[#allocation2 + $0x428] sm:$0xff]   ;;  %v5553_v46 = vld [vmem:[#allocation2 + $0x420] sm:$0xff]  }
 0x40a   :  { %5058 = vmatpush3.bf16.msra.mxu1 %v5510_v31  ;;  %4073 = vmatprep.mubr.bf16.mxu0 %v1730_v45  ;;  %v5552_v45 = vld [vmem:[#allocation2 + $0x4e0] sm:$0xff]  }
 0x40b   :  { %5037 = vmatprep.subr.bf16.mxu0 %v5511_v51  ;;  %4113 = vmatprep.mubr.bf16.mxu1 %v1732_v33  ;;  %v1586_v33 = vcombine.high %v6935_v59, %v6941_v9  ;;  %v5554_v31 = vld [vmem:[#allocation2 + $0x4a0] sm:$0xff]   ;;  %v5555_v51 = vld [vmem:[#allocation2 + $0x458] sm:$0xff]   ;;  %v5562_v9 = vld [vmem:[#allocation2 + $0x490] sm:$0xff]  }
 0x40c   :  { %5059 = vmatprep.subr.bf16.mxu1 %v5512_v49  ;;  %v5556_v49 = vld [vmem:[#allocation2 + $0x4d8] sm:$0xff]  }
 0x40d   :  { %5038 = vmatpush3.bf16.msra.mxu0 %v5513_v54  ;;  %v5557_v54 = vld [vmem:[#allocation2 + $0x418] sm:$0xff]  }
 0x40e   :  { %5060 = vmatpush3.bf16.msra.mxu1 %v5514_v55  ;;  %5039 = vmatprep.subr.bf16.mxu0 %v5515_v56  ;;  %v6992_v55 = vrot.slane %v1586_v33, %v6947_v12  ;;  %v5558_v56 = vld [vmem:[#allocation2 + $0x498] sm:$0xff]   ;;  %v5597_v33 = vld [vmem:[#allocation2 + $0x508] sm:$0xff]  }
 0x40f   :  { %5061 = vmatprep.subr.bf16.mxu1 %v5516_v57  ;;  %v5559_v57 = vld [vmem:[#allocation2 + $0x450] sm:$0xff]  }
 0x410   :  { %v1602_v59 = vcombine.high %v6992_v55, %v6992_v55 }
 0x411   :  { %5040 = vmatpush3.bf16.msra.mxu0 %v5517_v50  ;;  %v5560_v50 = vld [vmem:[#allocation2 + $0x4d0] sm:$0xff]  }
 0x412   :  { %5062 = vmatpush3.bf16.msra.mxu1 %v5518_v58  ;;  %5041 = vmatprep.subr.bf16.mxu0 %v5519_v61  ;;  %v5561_v58 = vld [vmem:[#allocation2 + $0x410] sm:$0xff]   ;;  %v5563_v61 = vld [vmem:[#allocation2 + $0x448] sm:$0xff]  }
 0x413   :  { %5063 = vmatprep.subr.bf16.mxu1 %v5520_v62  ;;  %v1609_v62 = vrot.slane %v6982_v30, %v6947_v12 }
 0x415   :  { %5042 = vmatpush3.bf16.msra.mxu0 %v5521_v63  ;;  %v5564_v63 = vld [vmem:[#allocation2 + $0x4c8] sm:$0xff]   ;;  %v1733_v10 = vpack.c.bf16 %v1609_v62, %v1609_v62 }
 0x416   :  { %5064 = vmatpush3.bf16.msra.mxu1 %v5522_v1  ;;  %5043 = vmatprep.subr.bf16.mxu0 %v5523_v48  ;;  %v1630_v1 = vrot.slane %v1602_v59, %v6947_v12  ;;  %v5566_v48 = vld [vmem:[#allocation2 + $0x488] sm:$0xff]  }
 0x417   :  { %5065 = vmatprep.subr.bf16.mxu1 %v5524_v2  ;;  %v5567_v2 = vld [vmem:[#allocation2 + $0x440] sm:$0xff]  }
 0x418   :  { %v1738_v53 = vpack.c.bf16 %v1630_v1, %v1630_v1 }
 0x419   :  { %5044 = vmatpush3.bf16.msra.mxu0 %v5525_v29  ;;  %v1631_v29 = vcombine.high %v1609_v62, %v1609_v62 }
 0x41a   :  { %5066 = vmatpush3.bf16.msra.mxu1 %v5526_v4  ;;  %5045 = vmatprep.subr.bf16.mxu0 %v5527_v5  ;;  %v5568_v4 = vld [vmem:[#allocation2 + $0x4c0] sm:$0xff]  }
 0x41b   :  { %5067 = vmatprep.subr.bf16.mxu1 %v5528_v7  ;;  %v5569_v5 = vld [vmem:[#allocation2 + $0x400] sm:$0xff]   ;;  %v1634_v7 = vcombine.high %v1630_v1, %v1630_v1  ;;  %v1735_v30 = vpack.c.bf16 %v1631_v29, %v1631_v29  ;;  %v5606_v1 = vld [vmem:[#allocation2 + $0x6b8] sm:$0xff]   ;;  %v5609_v29 = vld [vmem:[#allocation2 + $0x630] sm:$0xff]  }
 0x41d   :  { %5046 = vmatpush3.bf16.msra.mxu0 %v5529_v8  ;;  %v5570_v8 = vld [vmem:[#allocation2 + $0x480] sm:$0xff]  }
 0x41e   :  { %5068 = vmatpush3.bf16.msra.mxu1 %v5530_v52  ;;  %5047 = vmatprep.subr.bf16.mxu0 %v5531_v11  ;;  %v5571_v52 = vld [vmem:[#allocation2 + $0x578] sm:$0xff]  }
 0x41f   :  { %5069 = vmatprep.subr.bf16.mxu1 %v5532_v34  ;;  %v5572_v11 = vld [vmem:[#allocation2 + $0x5f8] sm:$0xff]  }
 0x420   :  { %v5573_v34 = vld [vmem:[#allocation2 + $0x538] sm:$0xff]  }
 0x421   :  { %5048 = vmatpush3.bf16.msra.mxu0 %v5533_v13  ;;  %v1740_v13 = vpack.c.bf16 %v1634_v7, %v1634_v7  ;;  %v5612_v7 = vld [vmem:[#allocation2 + $0x6e8] sm:$0xff]  }
 0x422   :  { %5070 = vmatpush3.bf16.msra.mxu1 %v5534_v14  ;;  %5049 = vmatprep.subr.bf16.mxu0 %v5535_v17  ;;  %v5575_v14 = vld [vmem:[#allocation2 + $0x570] sm:$0xff]  }
 0x423   :  { %5071 = vmatprep.subr.bf16.mxu1 %v5536_v19  ;;  %v5576_v17 = vld [vmem:[#allocation2 + $0x5f0] sm:$0xff]  }
 0x424   :  { %v5578_v19 = vld [vmem:[#allocation2 + $0x5b0] sm:$0xff]  }
 0x425   :  { %5050 = vmatpush3.bf16.msra.mxu0 %v5537_v20  ;;  %v5579_v20 = vld [vmem:[#allocation2 + $0x568] sm:$0xff]  }
 0x426   :  { %5072 = vmatpush3.bf16.msra.mxu1 %v5538_v47  ;;  %5079 = vmatprep.subr.bf16.mxu0 %v5539_v22  ;;  %v5581_v47 = vld [vmem:[#allocation2 + $0x528] sm:$0xff]   ;;  %v5584_v22 = vld [vmem:[#allocation2 + $0x5e0] sm:$0xff]  }
 0x427   :  { %5101 = vmatprep.subr.bf16.mxu1 %v5540_v23  ;;  %v5585_v23 = vld [vmem:[#allocation2 + $0x520] sm:$0xff]  }
 0x428   :  { %4074 = vmatmul.mubr.bf16.vlgmr.msra.gmra.mxu0 %v1729_v21  ;;  %v5582_v21 = vld [vmem:[#allocation2 + $0x5a8] sm:$0xff]  }
 0x429   :  { %4114 = vmatmul.mubr.bf16.vlgmr.msra.gmra.mxu1 %v1731_v16  ;;  %5080 = vmatpush3.bf16.msra.mxu0 %v5541_v26  ;;  %v5583_v16 = vld [vmem:[#allocation2 + $0x560] sm:$0xff]  }
 0x42a   :  { %5102 = vmatpush3.bf16.msra.mxu1 %v5542_v32  ;;  %4153 = vmatprep.mubr.bf16.mxu0 %v1734_v25  ;;  %v1635_v25 = vcombine.low %v6937_v60, %v6943_v6  ;;  %v5586_v26 = vld [vmem:[#allocation2 + $0x5a0] sm:$0xff]   ;;  %v5588_v32 = vld [vmem:[#allocation2 + $0x5d8] sm:$0xff]  }
 0x42b   :  { %5081 = vmatprep.subr.bf16.mxu0 %v5543_v36  ;;  %4193 = vmatprep.mubr.bf16.mxu1 %v1736_v27  ;;  %v5587_v27 = vld [vmem:[#allocation2 + $0x558] sm:$0xff]  }
 0x42c   :  { %5103 = vmatprep.subr.bf16.mxu1 %v5544_v37  ;;  %v5589_v36 = vld [vmem:[#allocation2 + $0x518] sm:$0xff]   ;;  %v7002_v37 = vrot.slane %v1635_v25, %v6947_v12  ;;  %v5630_v25 = vld [vmem:[#allocation2 + $0x688] sm:$0xff]  }
 0x42d   :  { %5082 = vmatpush3.bf16.msra.mxu0 %v5545_v39  ;;  %v5590_v39 = vld [vmem:[#allocation2 + $0x598] sm:$0xff]  }
 0x42e   :  { %5104 = vmatpush3.bf16.msra.mxu1 %v5546_v40  ;;  %5083 = vmatprep.subr.bf16.mxu0 %v5547_v41  ;;  %v5591_v40 = vld [vmem:[#allocation2 + $0x550] sm:$0xff]  }
 0x42f   :  { %5105 = vmatprep.subr.bf16.mxu1 %v5548_v42  ;;  %v5592_v41 = vld [vmem:[#allocation2 + $0x5d0] sm:$0xff]  }
 0x430   :  { %v5593_v42 = vld [vmem:[#allocation2 + $0x510] sm:$0xff]  }
 0x431   :  { %5084 = vmatpush3.bf16.msra.mxu0 %v5549_v28  ;;  %v1651_v28 = vcombine.high %v7002_v37, %v7002_v37 }
 0x432   :  { %5106 = vmatpush3.bf16.msra.mxu1 %v5550_v43  ;;  %5085 = vmatprep.subr.bf16.mxu0 %v5551_v44  ;;  %v5594_v43 = vld [vmem:[#allocation2 + $0x590] sm:$0xff]   ;;  %v5595_v44 = vld [vmem:[#allocation2 + $0x548] sm:$0xff]  }
 0x433   :  { %5107 = vmatprep.subr.bf16.mxu1 %v5552_v45  ;;  %v1616_v45 = vrot.slane %v6992_v55, %v6947_v12 }
 0x435   :  { %5086 = vmatpush3.bf16.msra.mxu0 %v5553_v46  ;;  %v5596_v46 = vld [vmem:[#allocation2 + $0x5c8] sm:$0xff]   ;;  %v1737_v59 = vpack.c.bf16 %v1616_v45, %v1616_v45 }
 0x436   :  { %5108 = vmatpush3.bf16.msra.mxu1 %v5554_v31  ;;  %5087 = vmatprep.subr.bf16.mxu0 %v5555_v51  ;;  %v1673_v31 = vrot.slane %v1651_v28, %v6947_v12  ;;  %v5598_v51 = vld [vmem:[#allocation2 + $0x588] sm:$0xff]   ;;  %v2263_v28 = vsub.s32 4, %v6539_v15 }
 0x437   :  { %5109 = vmatprep.subr.bf16.mxu1 %v5556_v49  ;;  %v5599_v49 = vld [vmem:[#allocation2 + $0x540] sm:$0xff]  }
 0x438   :  { %v1742_v62 = vpack.c.bf16 %v1673_v31, %v1673_v31 }
 0x439   :  { %5088 = vmatpush3.bf16.msra.mxu0 %v5557_v54  ;;  %v1632_v54 = vcombine.high %v1616_v45, %v1616_v45  ;;  %v5637_v45 = vld [vmem:[#allocation2 + $0x738] sm:$0xff]  }
 0x43a   :  { %5110 = vmatpush3.bf16.msra.mxu1 %v5558_v56  ;;  %5089 = vmatprep.subr.bf16.mxu0 %v5559_v57  ;;  %v5600_v56 = vld [vmem:[#allocation2 + $0x5c0] sm:$0xff]  }
 0x43b   :  { %5111 = vmatprep.subr.bf16.mxu1 %v5560_v50  ;;  %v5601_v57 = vld [vmem:[#allocation2 + $0x500] sm:$0xff]   ;;  %v1683_v50 = vcombine.high %v1673_v31, %v1673_v31  ;;  %v1739_v55 = vpack.c.bf16 %v1632_v54, %v1632_v54  ;;  %v5638_v31 = vld [vmem:[#allocation2 + $0x7b8] sm:$0xff]   ;;  %v5639_v54 = vld [vmem:[#allocation2 + $0x770] sm:$0xff]  }
 0x43d   :  { %5090 = vmatpush3.bf16.msra.mxu0 %v5561_v58  ;;  %v5602_v58 = vld [vmem:[#allocation2 + $0x580] sm:$0xff]  }
 0x43e   :  { %5112 = vmatpush3.bf16.msra.mxu1 %v5562_v9  ;;  %5091 = vmatprep.subr.bf16.mxu0 %v5563_v61  ;;  %v5603_v9 = vld [vmem:[#allocation2 + $0x678] sm:$0xff]  }
 0x43f   :  { %5113 = vmatprep.subr.bf16.mxu1 %v5564_v63  ;;  %v5604_v61 = vld [vmem:[#allocation2 + $0x6f8] sm:$0xff]  }
 0x440   :  { %v5605_v63 = vld [vmem:[#allocation2 + $0x638] sm:$0xff]  }
 0x441   :  { %5092 = vmatpush3.bf16.msra.mxu0 %v5565_v0  ;;  %v1744_v0 = vpack.c.bf16 %v1683_v50, %v1683_v50 }
 0x442   :  { %5114 = vmatpush3.bf16.msra.mxu1 %v5566_v48  ;;  %5093 = vmatprep.subr.bf16.mxu0 %v5567_v2  ;;  %v5607_v48 = vld [vmem:[#allocation2 + $0x670] sm:$0xff]  }
 0x443   :  { %5115 = vmatprep.subr.bf16.mxu1 %v5568_v4  ;;  %v5608_v2 = vld [vmem:[#allocation2 + $0x6f0] sm:$0xff]  }
 0x444   :  { %v5610_v4 = vld [vmem:[#allocation2 + $0x6b0] sm:$0xff]  }
 0x445   :  { %5094 = vmatpush3.bf16.msra.mxu0 %v5569_v5  ;;  %v5611_v5 = vld [vmem:[#allocation2 + $0x668] sm:$0xff]  }
 0x446   :  { %5116 = vmatpush3.bf16.msra.mxu1 %v5570_v8  ;;  %5123 = vmatprep.subr.bf16.mxu0 %v5571_v52  ;;  %v5613_v8 = vld [vmem:[#allocation2 + $0x628] sm:$0xff]   ;;  %v5616_v52 = vld [vmem:[#allocation2 + $0x6e0] sm:$0xff]  }
 0x447   :  { %5145 = vmatprep.subr.bf16.mxu1 %v5572_v11  ;;  %v5617_v11 = vld [vmem:[#allocation2 + $0x620] sm:$0xff]  }
 0x448   :  { %4154 = vmatmul.mubr.bf16.vlgmr.msra.gmra.mxu0 %v1733_v10  ;;  %v5614_v10 = vld [vmem:[#allocation2 + $0x6a8] sm:$0xff]  }
 0x449   :  { %4194 = vmatmul.mubr.bf16.vlgmr.msra.gmra.mxu1 %v1735_v30  ;;  %5124 = vmatpush3.bf16.msra.mxu0 %v5573_v34  ;;  %v5615_v30 = vld [vmem:[#allocation2 + $0x660] sm:$0xff]  }
 0x44a   :  { %5146 = vmatpush3.bf16.msra.mxu1 %v5574_v35  ;;  %4233 = vmatprep.mubr.bf16.mxu0 %v1738_v53  ;;  %v1636_v53 = vcombine.high %v6937_v60, %v6943_v6  ;;  %v5618_v34 = vld [vmem:[#allocation2 + $0x6a0] sm:$0xff]   ;;  %v5620_v35 = vld [vmem:[#allocation2 + $0x6d8] sm:$0xff]   ;;  %v5626_v6 = vld [vmem:[#allocation2 + $0x690] sm:$0xff]  }
 0x44b   :  { %5125 = vmatprep.subr.bf16.mxu0 %v5575_v14  ;;  %4273 = vmatprep.mubr.bf16.mxu1 %v1740_v13  ;;  %v5619_v13 = vld [vmem:[#allocation2 + $0x658] sm:$0xff]  }
 0x44c   :  { %5147 = vmatprep.subr.bf16.mxu1 %v5576_v17  ;;  %v5621_v14 = vld [vmem:[#allocation2 + $0x618] sm:$0xff]   ;;  %v7012_v17 = vrot.slane %v1636_v53, %v6947_v12 }
 0x44d   :  { %5126 = vmatpush3.bf16.msra.mxu0 %v5577_v18  ;;  %v5622_v18 = vld [vmem:[#allocation2 + $0x698] sm:$0xff]  }
 0x44e   :  { %5148 = vmatpush3.bf16.msra.mxu1 %v5578_v19  ;;  %5127 = vmatprep.subr.bf16.mxu0 %v5579_v20  ;;  %v5623_v19 = vld [vmem:[#allocation2 + $0x650] sm:$0xff]   ;;  %v1652_v60 = vcombine.high %v7012_v17, %v7012_v17  ;;  %v5653_v53 = vld [vmem:[#allocation2 + $0x718] sm:$0xff]  }
 0x44f   :  { %5149 = vmatprep.subr.bf16.mxu1 %v5580_v38  ;;  %v5624_v20 = vld [vmem:[#allocation2 + $0x6d0] sm:$0xff]  }
 0x450   :  { %v5625_v38 = vld [vmem:[#allocation2 + $0x610] sm:$0xff]  }
 0x451   :  { %5128 = vmatpush3.bf16.msra.mxu0 %v5581_v47  ;;  %v5627_v47 = vld [vmem:[#allocation2 + $0x648] sm:$0xff]  }
 0x452   :  { %5150 = vmatpush3.bf16.msra.mxu1 %v5582_v21  ;;  %5129 = vmatprep.subr.bf16.mxu0 %v5583_v16  ;;  %v1659_v21 = vrot.slane %v7002_v37, %v6947_v12  ;;  %v5628_v16 = vld [vmem:[#allocation2 + $0x6c8] sm:$0xff]  }
 0x453   :  { %5151 = vmatprep.subr.bf16.mxu1 %v5584_v22  ;;  %v5629_v22 = vld [vmem:[#allocation2 + $0x608] sm:$0xff]  }
 0x455   :  { %5130 = vmatpush3.bf16.msra.mxu0 %v5585_v23  ;;  %v1680_v23 = vrot.slane %v1652_v60, %v6947_v12  ;;  %v5661_v60 = vld [vmem:[#allocation2 + $0x708] sm:$0xff]  }
 0x456   :  { %5152 = vmatpush3.bf16.msra.mxu1 %v5586_v26  ;;  %5131 = vmatprep.subr.bf16.mxu0 %v5587_v27  ;;  %v5631_v26 = vld [vmem:[#allocation2 + $0x640] sm:$0xff]   ;;  %v1681_v27 = vcombine.high %v1659_v21, %v1659_v21 }
 0x457   :  { %5153 = vmatprep.subr.bf16.mxu1 %v5588_v32  ;;  %v5632_v32 = vld [vmem:[#allocation2 + $0x6c0] sm:$0xff]  }
 0x458   :  { %v1743_v37 = vpack.c.bf16 %v1681_v27, %v1681_v27 }
 0x459   :  { %5132 = vmatpush3.bf16.msra.mxu0 %v5589_v36  ;;  %v5633_v36 = vld [vmem:[#allocation2 + $0x600] sm:$0xff]  }
 0x45a   :  { %5154 = vmatpush3.bf16.msra.mxu1 %v5590_v39  ;;  %5133 = vmatprep.subr.bf16.mxu0 %v5591_v40  ;;  %v1684_v39 = vcombine.high %v1680_v23, %v1680_v23  ;;  %v5634_v40 = vld [vmem:[#allocation2 + $0x680] sm:$0xff]  }
 0x45b   :  { %5155 = vmatprep.subr.bf16.mxu1 %v5592_v41  ;;  %v1741_v41 = vpack.c.bf16 %v1659_v21, %v1659_v21 }
 0x45d   :  { %5134 = vmatpush3.bf16.msra.mxu0 %v5593_v42  ;;  %v5635_v42 = vld [vmem:[#allocation2 + $0x778] sm:$0xff]  }
 0x45e   :  { %5156 = vmatpush3.bf16.msra.mxu1 %v5594_v43  ;;  %5135 = vmatprep.subr.bf16.mxu0 %v5595_v44  ;;  %v5636_v43 = vld [vmem:[#allocation2 + $0x7f8] sm:$0xff]   ;;  %v1746_v44 = vpack.c.bf16 %v1680_v23, %v1680_v23  ;;  %v5666_v23 = vld [vmem:[#allocation2 + $0x780] sm:$0xff]  }
 0x45f   :  { %5157 = vmatprep.subr.bf16.mxu1 %v5596_v46  ;;  %v1748_v46 = vpack.c.bf16 %v1684_v39, %v1684_v39 }
 0x461   :  { %5136 = vmatpush3.bf16.msra.mxu0 %v5597_v33 }
 0x462   :  { %5158 = vmatpush3.bf16.msra.mxu1 %v5598_v51  ;;  %5137 = vmatprep.subr.bf16.mxu0 %v5599_v49  ;;  %v2264_v49 = vrot.slane %v6728_v24, %v2263_v28 }
 0x463   :  { %5159 = vmatprep.subr.bf16.mxu1 %v5600_v56 }
 0x465   :  { %5138 = vmatpush3.bf16.msra.mxu0 %v5601_v57  ;;  %v5640_v57 = vld [vmem:[#allocation2 + $0x7f0] sm:$0xff]  }
 0x466   :  { %5160 = vmatpush3.bf16.msra.mxu1 %v5602_v58  ;;  %5167 = vmatprep.subr.bf16.mxu0 %v5603_v9 }
 0x467   :  { %5189 = vmatprep.subr.bf16.mxu1 %v5604_v61  ;;  %v5642_v61 = vld [vmem:[#allocation2 + $0x7b0] sm:$0xff]  }
 0x468   :  { %4234 = vmatmul.mubr.bf16.vlgmr.msra.gmra.mxu0 %v1737_v59  ;;  %v5641_v59 = vld [vmem:[#allocation2 + $0x730] sm:$0xff]  }
 0x469   :  { %4274 = vmatmul.mubr.bf16.vlgmr.msra.gmra.mxu1 %v1739_v55  ;;  %5168 = vmatpush3.bf16.msra.mxu0 %v5605_v63 }
 0x46a   :  { %5190 = vmatpush3.bf16.msra.mxu1 %v5606_v1  ;;  %4313 = vmatprep.mubr.bf16.mxu0 %v1742_v62 }
 0x46b   :  { %5169 = vmatprep.subr.bf16.mxu0 %v5607_v48  ;;  %4353 = vmatprep.mubr.bf16.mxu1 %v1744_v0  ;;  %v5643_v0 = vld [vmem:[#allocation2 + $0x768] sm:$0xff]  }
 0x46c   :  { %5191 = vmatprep.subr.bf16.mxu1 %v5608_v2  ;;  %v5644_v48 = vld [vmem:[#allocation2 + $0x7e8] sm:$0xff]  }
 0x46d   :  { %5170 = vmatpush3.bf16.msra.mxu0 %v5609_v29 }
 0x46e   :  { %5192 = vmatpush3.bf16.msra.mxu1 %v5610_v4  ;;  %5171 = vmatprep.subr.bf16.mxu0 %v5611_v5  ;;  %v5645_v4 = vld [vmem:[#allocation2 + $0x728] sm:$0xff]  }
 0x46f   :  { %5193 = vmatprep.subr.bf16.mxu1 %v5612_v7  ;;  %v5646_v5 = vld [vmem:[#allocation2 + $0x7a8] sm:$0xff]   ;;  %v5647_v7 = vld [vmem:[#allocation2 + $0x760] sm:$0xff]  }
 0x471   :  { %5172 = vmatpush3.bf16.msra.mxu0 %v5613_v8  ;;  %v5648_v8 = vld [vmem:[#allocation2 + $0x7e0] sm:$0xff]  }
 0x472   :  { %5194 = vmatpush3.bf16.msra.mxu1 %v5614_v10  ;;  %5173 = vmatprep.subr.bf16.mxu0 %v5615_v30  ;;  %v5649_v10 = vld [vmem:[#allocation2 + $0x720] sm:$0xff]  }
 0x473   :  { %5195 = vmatprep.subr.bf16.mxu1 %v5616_v52  ;;  %v5650_v30 = vld [vmem:[#allocation2 + $0x7a0] sm:$0xff]   ;;  %v5651_v52 = vld [vmem:[#allocation2 + $0x758] sm:$0xff]  }
 0x475   :  { %5174 = vmatpush3.bf16.msra.mxu0 %v5617_v11  ;;  %v5652_v11 = vld [vmem:[#allocation2 + $0x7d8] sm:$0xff]  }
 0x476   :  { %5196 = vmatpush3.bf16.msra.mxu1 %v5618_v34  ;;  %5175 = vmatprep.subr.bf16.mxu0 %v5619_v13  ;;  %v5654_v34 = vld [vmem:[#allocation2 + $0x798] sm:$0xff]   ;;  %v5655_v13 = vld [vmem:[#allocation2 + $0x750] sm:$0xff]  }
 0x477   :  { %5197 = vmatprep.subr.bf16.mxu1 %v5620_v35  ;;  %v5656_v35 = vld [vmem:[#allocation2 + $0x7d0] sm:$0xff]  }
 0x479   :  { %5176 = vmatpush3.bf16.msra.mxu0 %v5621_v14  ;;  %v5657_v14 = vld [vmem:[#allocation2 + $0x710] sm:$0xff]  }
 0x47a   :  { %5198 = vmatpush3.bf16.msra.mxu1 %v5622_v18  ;;  %5177 = vmatprep.subr.bf16.mxu0 %v5623_v19  ;;  %v5658_v18 = vld [vmem:[#allocation2 + $0x790] sm:$0xff]   ;;  %v5659_v19 = vld [vmem:[#allocation2 + $0x748] sm:$0xff]  }
 0x47b   :  { %5199 = vmatprep.subr.bf16.mxu1 %v5624_v20  ;;  %v1666_v20 = vrot.slane %v7012_v17, %v6947_v12  ;;  %v4444_v12 = vld [vmem:[%s7053_s1] sm:$0x3] }
 0x47c   :  { %4446 = vrot.lane.b32.xlu0 %v4444_v12, %s5699_s21 }
 0x47d   :  { %5178 = vmatpush3.bf16.msra.mxu0 %v5625_v38  ;;  %v5660_v38 = vld [vmem:[#allocation2 + $0x7c8] sm:$0xff]   ;;  %v1682_v21 = vcombine.high %v1666_v20, %v1666_v20 }
 0x47e   :  { %5200 = vmatpush3.bf16.msra.mxu1 %v5626_v6  ;;  %5179 = vmatprep.subr.bf16.mxu0 %v5627_v47  ;;  %v5662_v6 = vld [vmem:[#allocation2 + $0x788] sm:$0xff]   ;;  %v5663_v47 = vld [vmem:[#allocation2 + $0x740] sm:$0xff]  }
 0x47f   :  { %5201 = vmatprep.subr.bf16.mxu1 %v5628_v16  ;;  %v5664_v16 = vld [vmem:[#allocation2 + $0x7c0] sm:$0xff]  }
 0x481   :  { %5180 = vmatpush3.bf16.msra.mxu0 %v5629_v22  ;;  %v5665_v22 = vld [vmem:[#allocation2 + $0x700] sm:$0xff]  }
 0x482   :  { %5202 = vmatpush3.bf16.msra.mxu1 %v5630_v25  ;;  %5181 = vmatprep.subr.bf16.mxu0 %v5631_v26  ;;  %v1745_v25 = vpack.c.bf16 %v1666_v20, %v1666_v20  ;;  %v1747_v26 = vpack.c.bf16 %v1682_v21, %v1682_v21 }
 0x483   :  { %5203 = vmatprep.subr.bf16.mxu1 %v5632_v32 }
 0x485   :  { %5182 = vmatpush3.bf16.msra.mxu0 %v5633_v36 }
 0x486   :  { %5204 = vmatpush3.bf16.msra.mxu1 %v5634_v40  ;;  %5211 = vmatprep.subr.bf16.mxu0 %v5635_v42 }
 0x487   :  { %5233 = vmatprep.subr.bf16.mxu1 %v5636_v43 }
 0x488   :  { %v4919_v33 = vpop.f32.mrf.mxu0  ;;  %4314 = vmatmul.mubr.bf16.vlgmr.msra.gmra.mxu0 %v1741_v41 }
 0x489   :  { %v4941_v51 = vpop.f32.mrf.mxu1  ;;  %4354 = vmatmul.mubr.bf16.vlgmr.msra.gmra.mxu1 %v1743_v37  ;;  %5212 = vmatpush3.bf16.msra.mxu0 %v5637_v45 }
 0x48a   :  { %5234 = vmatpush3.bf16.msra.mxu1 %v5638_v31  ;;  %v4920_v56 = vpop.f32.mrf.mxu0  ;;  %4393 = vmatprep.mubr.bf16.mxu0 %v1746_v44 }
 0x48b   :  { %v4921_v50 = vadd.f32 %v4920_v56, %v4919_v33  ;;  %v4942_v58 = vpop.f32.mrf.mxu1  ;;  %5213 = vmatprep.subr.bf16.mxu0 %v5639_v54  ;;  %4433 = vmatprep.mubr.bf16.mxu1 %v1748_v46 }
 0x48c   :  { %v4943_v55 = vadd.f32 %v4942_v58, %v4941_v51  ;;  %v4922_v9 = vpop.f32.mrf.mxu0  ;;  %5235 = vmatprep.subr.bf16.mxu1 %v5640_v57 }
 0x48d   :  { %v3836_v62 = vadd.f32 %v4921_v50, %v2264_v49  ;;  %v4944_v63 = vpop.f32.mrf.mxu1  ;;  %5214 = vmatpush3.bf16.msra.mxu0 %v5641_v59 }
 0x48e   :  { %5236 = vmatpush3.bf16.msra.mxu1 %v5642_v61  ;;  %v4923_v1 = vpop.f32.mrf.mxu0  ;;  %5215 = vmatprep.subr.bf16.mxu0 %v5643_v0 }
 0x48f   :  { %v7021_v2 = vadd.f32 %v4943_v55, %v3836_v62  ;;  %v4945_v29 = vpop.f32.mrf.mxu1  ;;  %5237 = vmatprep.subr.bf16.mxu1 %v5644_v48 }
 0x491   :  { %5216 = vmatpush3.bf16.msra.mxu0 %v5645_v4 }
 0x492   :  { %5238 = vmatpush3.bf16.msra.mxu1 %v5646_v5  ;;  %5217 = vmatprep.subr.bf16.mxu0 %v5647_v7  ;;  %v4458_v7 = vld [vmem:[%s7057_s5 + $0x18] sm:$0xff] }
 0x493   :  { %5239 = vmatprep.subr.bf16.mxu1 %v5648_v8  ;;  %v4457_v8 = vld [vmem:[%s7057_s5 + $0x10] sm:$0xff] }
 0x495   :  { %5218 = vmatpush3.bf16.msra.mxu0 %v5649_v10  ;;  %v4456_v10 = vld [vmem:[%s7057_s5 + $0x8] sm:$0xff] }
 0x496   :  { %5240 = vmatpush3.bf16.msra.mxu1 %v5650_v30  ;;  %5219 = vmatprep.subr.bf16.mxu0 %v5651_v52 }
 0x497   :  { %5241 = vmatprep.subr.bf16.mxu1 %v5652_v11 }
 0x499   :  { %5220 = vmatpush3.bf16.msra.mxu0 %v5653_v53 }
 0x49a   :  { %5242 = vmatpush3.bf16.msra.mxu1 %v5654_v34  ;;  %5221 = vmatprep.subr.bf16.mxu0 %v5655_v13 }
 0x49b   :  { %5243 = vmatprep.subr.bf16.mxu1 %v5656_v35 }
 0x49d   :  { %5222 = vmatpush3.bf16.msra.mxu0 %v5657_v14 }
 0x49e   :  { %5244 = vmatpush3.bf16.msra.mxu1 %v5658_v18  ;;  %5223 = vmatprep.subr.bf16.mxu0 %v5659_v19 }
 0x49f   :  { %5245 = vmatprep.subr.bf16.mxu1 %v5660_v38 }
 0x4a1   :  { %5224 = vmatpush3.bf16.msra.mxu0 %v5661_v60 }
 0x4a2   :  { %5246 = vmatpush3.bf16.msra.mxu1 %v5662_v6  ;;  %5225 = vmatprep.subr.bf16.mxu0 %v5663_v47 }
 0x4a3   :  { %5247 = vmatprep.subr.bf16.mxu1 %v5664_v16 }
 0x4a5   :  { %5226 = vmatpush3.bf16.msra.mxu0 %v5665_v22 }
 0x4a6   :  { %5248 = vmatpush3.bf16.msra.mxu1 %v5666_v23  ;;  %5295 = vmatprep.subr.mxu0 %v5695_v3 }
 0x4a8   :  { %v4963_v17 = vpop.f32.mrf.mxu0  ;;  %4394 = vmatmul.mubr.bf16.vlgmr.msra.gmra.mxu0 %v1745_v25 }
 0x4a9   :  { %v4985_v27 = vpop.f32.mrf.mxu1  ;;  %4434 = vmatmul.mubr.bf16.vlgmr.msra.gmra.mxu1 %v1747_v26  ;;  %5303 = vmatprep.mubr.msk.f32.mxu0 %vm5696_vm3, %v5695_v3 }
 0x4aa   :  { %v4964_v32 = vpop.f32.mrf.mxu0  ;;  %5296 = vmatpush3.msra.mxu0 %v4458_v7 }
 0x4ab   :  { %v4965_v36 = vadd.f32 %v4964_v32, %v4963_v17  ;;  %v4986_v39 = vpop.f32.mrf.mxu1  ;;  %5297 = vmatprep.subr.mxu0 %v5695_v3 }
 0x4ac   :  { %v4987_v40 = vadd.f32 %v4986_v39, %v4985_v27  ;;  %v4966_v41 = vpop.f32.mrf.mxu0  ;;  %5298 = vmatpush3.msra.mxu0 %v4457_v8 }
 0x4ad   :  { %v3916_v37 = vadd.f32 %v4965_v36, %v7021_v2  ;;  %v4988_v42 = vpop.f32.mrf.mxu1  ;;  %5299 = vmatprep.subr.mxu0 %v5695_v3 }
 0x4ae   :  { %v4967_v28 = vpop.f32.mrf.mxu0  ;;  %5300 = vmatpush3.msra.mxu0 %v4456_v10 }
 0x4af   :  { %v3956_v43 = vadd.f32 %v4987_v40, %v3916_v37  ;;  %v4989_v44 = vpop.f32.mrf.mxu1  ;;  %5301 = vmatprep.subr.mxu0 %v5695_v3 }
 0x4c8   :  { %v5007_v45 = vpop.f32.mrf.mxu0 }
 0x4c9   :  { %v5029_v46 = vpop.f32.mrf.mxu1 }
 0x4ca   :  { %v5008_v33 = vpop.f32.mrf.mxu0 }
 0x4cb   :  { %v5009_v31 = vadd.f32 %v5008_v33, %v5007_v45  ;;  %v5030_v51 = vpop.f32.mrf.mxu1 }
 0x4cc   :  { %v5031_v49 = vadd.f32 %v5030_v51, %v5029_v46  ;;  %v5010_v54 = vpop.f32.mrf.mxu0 }
 0x4cd   :  { %v3996_v56 = vadd.f32 %v5009_v31, %v3956_v43  ;;  %v5032_v57 = vpop.f32.mrf.mxu1 }
 0x4ce   :  { %v5011_v50 = vpop.f32.mrf.mxu0 }
 0x4cf   :  { %v4036_v58 = vadd.f32 %v5031_v49, %v3996_v56  ;;  %v5033_v59 = vpop.f32.mrf.mxu1 }
 0x4e8   :  { %v5051_v55 = vpop.f32.mrf.mxu0 }
 0x4e9   :  { %v5073_v9 = vpop.f32.mrf.mxu1 }
 0x4ea   :  { %v5052_v61 = vpop.f32.mrf.mxu0 }
 0x4eb   :  { %v5053_v62 = vadd.f32 %v5052_v61, %v5051_v55  ;;  %v5074_v63 = vpop.f32.mrf.mxu1 }
 0x4ec   :  { %v5075_v0 = vadd.f32 %v5074_v63, %v5073_v9  ;;  %v5054_v1 = vpop.f32.mrf.mxu0 }
 0x4ed   :  { %v4076_v48 = vadd.f32 %v5053_v62, %v4036_v58  ;;  %v5076_v2 = vpop.f32.mrf.mxu1  ;;  %v4455_v62 = vld [vmem:[%s7057_s5] sm:$0xff]  ;;  %s5669_s5 = scalar_lea.vmem %s4545_s0, 32 }
 0x4ee   :  { %v5055_v29 = vpop.f32.mrf.mxu0  ;;  %5302 = vmatpush3.msra.mxu0 %v4455_v62  ;;  %v4447_v63 = vpop.permute.xlu0 %4446  ;;  %p5670_p0 = scmp.ne.s32.totalorder %s4545_s0, %s5669_s5  ;;  %p5675_p2 = scmp.lt.s32.totalorder %s5669_s5, %s5669_s5 }
 0x4ef   :  { %v4116_v4 = vadd.f32 %v5075_v0, %v4076_v48  ;;  %v5077_v5 = vpop.f32.mrf.mxu1  ;;  %v4461_v29 = vsub.s32 5, %v6539_v15 }
 0x4f0   :  { %p5676_p3 = por %p5675_p2, %p5674_p1 }
 0x4f2   :  { %p5677_p4 = pnand %p5676_p3, %p5670_p0 }
 0x508   :  { %v5095_v30 = vpop.f32.mrf.mxu0 }
 0x509   :  { %v5117_v52 = vpop.f32.mrf.mxu1 }
 0x50a   :  { %v5096_v11 = vpop.f32.mrf.mxu0 }
 0x50b   :  { %v5097_v53 = vadd.f32 %v5096_v11, %v5095_v30  ;;  %v5118_v34 = vpop.f32.mrf.mxu1 }
 0x50c   :  { %v5119_v13 = vadd.f32 %v5118_v34, %v5117_v52  ;;  %v5098_v35 = vpop.f32.mrf.mxu0 }
 0x50d   :  { %v4156_v14 = vadd.f32 %v5097_v53, %v4116_v4  ;;  %v5120_v18 = vpop.f32.mrf.mxu1  ;;  %v4462_v4 = vrot.slane %v6728_v24, %v4461_v29 }
 0x50e   :  { %v5099_v19 = vpop.f32.mrf.mxu0 }
 0x50f   :  { %v4196_v20 = vadd.f32 %v5119_v13, %v4156_v14  ;;  %v5121_v38 = vpop.f32.mrf.mxu1 }
 0x528   :  { %v5139_v60 = vpop.f32.mrf.mxu0 }
 0x529   :  { %v5161_v6 = vpop.f32.mrf.mxu1 }
 0x52a   :  { %v5140_v47 = vpop.f32.mrf.mxu0 }
 0x52b   :  { %v5162_v21 = vpop.f32.mrf.mxu1  ;;  %v5141_v40 = vadd.f32 %v5140_v47, %v5139_v60 }
 0x52c   :  { %v5142_v16 = vpop.f32.mrf.mxu0  ;;  %v5163_v37 = vadd.f32 %v5162_v21, %v5161_v6 }
 0x52d   :  { %v5164_v22 = vpop.f32.mrf.mxu1  ;;  %v4236_v41 = vadd.f32 %v5141_v40, %v4196_v20 }
 0x52e   :  { %v5143_v23 = vpop.f32.mrf.mxu0 }
 0x52f   :  { %v5165_v25 = vpop.f32.mrf.mxu1  ;;  %v4276_v28 = vadd.f32 %v5163_v37, %v4236_v41 }
 0x548   :  { %v5183_v26 = vpop.f32.mrf.mxu0 }
 0x549   :  { %v5205_v12 = vpop.f32.mrf.mxu1 }
 0x54a   :  { %v5184_v17 = vpop.f32.mrf.mxu0 }
 0x54b   :  { %v5206_v27 = vpop.f32.mrf.mxu1  ;;  %v5185_v42 = vadd.f32 %v5184_v17, %v5183_v26 }
 0x54c   :  { %v5186_v3 = vpop.f32.mrf.mxu0  ;;  %v5207_v44 = vadd.f32 %v5206_v27, %v5205_v12 }
 0x54d   :  { %v5208_v32 = vpop.f32.mrf.mxu1  ;;  %v4316_v43 = vadd.f32 %v5185_v42, %v4276_v28 }
 0x54e   :  { %v5187_v36 = vpop.f32.mrf.mxu0 }
 0x54f   :  { %v5209_v39 = vpop.f32.mrf.mxu1  ;;  %v4356_v31 = vadd.f32 %v5207_v44, %v4316_v43 }
 0x568   :  { %v5227_v45 = vpop.f32.mrf.mxu0 }
 0x569   :  { %v5249_v46 = vpop.f32.mrf.mxu1 }
 0x56a   :  { %v5228_v33 = vpop.f32.mrf.mxu0 }
 0x56b   :  { %v5229_v51 = vadd.f32 %v5228_v33, %v5227_v45  ;;  %v5250_v49 = vpop.f32.mrf.mxu1 }
 0x56c   :  { %v5230_v54 = vpop.f32.mrf.mxu0  ;;  %v5251_v57 = vadd.f32 %v5250_v49, %v5249_v46 }
 0x56d   :  { %v4396_v56 = vadd.f32 %v5229_v51, %v4356_v31  ;;  %v5252_v50 = vpop.f32.mrf.mxu1 }
 0x56e   :  { %v5231_v58 = vpop.f32.mrf.mxu0 }
 0x56f   :  { %v4436_v59 = vadd.f32 %v5251_v57, %v4396_v56  ;;  %v5253_v55 = vpop.f32.mrf.mxu1 }
 0x571   :  { %v4441_v9 = vmul.f32 0.5, %v4436_v59 }
 0x573   :  { %v4442_v61 = vmul.f32 1.442695, %v4441_v9 }
 0x575   :  { %5667 = vpow2.f32 %v4442_v61 }
 0x582   :  { %v5668_v0 = vpop.eup %5667 }
 0x583   :  { %v4449_v1 = vmul.f32 %v5668_v0, %v4447_v63 }
 0x585   :  { %4451 = vrot.lane.b32.xlu0 %v4449_v1, %s5700_s7 }
 0x5f7   :  { %v4452_v48 = vpop.permute.xlu0 %4451 }
 0x5f8   :  { %v4454_v2 = vadd.f32 %v4452_v48, %v4436_v59 }
 0x5fa   :  { %5304 = vmatmul.mubr.msk.f32.vlgmr.msra.gmra.mxu0 %vm4463_vm5, %v4454_v2 }
 0x6ba   :  { %v4533_v5 = vpop.f32.mrf.mxu0 }
 0x6bb   :  { %v4534_v7 = vadd.f32 %v4533_v5, %v4462_v4 }
 0x6bc   :  { %v5305_v8 = vpop.f32.mrf.mxu0 }
 0x6bd   :  { %4537 = vst [vmem:[#allocation4] sm:$0x3] %v4534_v7 }
 0x6be   :  { %5680 = shalt.err (!%p5677_p4)
}
 0x6bf   :  { %4547 = dma.vmem_to_hbm [thread:$0]  %s4545_s0, 32, %s7061_s9, [#allocation5]  }
 0x6c0   :  { %5691 = dma.done.wait [#allocation5], 32  }
 0x6c1   :  { %5692 = vsyncadd [#allocation5], 4294967264 }
 0x6c2   :  { %4551 = vsyncpa [#allocation5], 1 }
 0x6c3   :  { %4552 = vsyncmov [#allocation3] }
 0x6c6   :  { %s4553_s10 = vpop.sfrf %4552 }
 0x6c7   :  { %p4885_p5 = scmp.ne.s32.totalorder %s4553_s10, 0 }
 0x6c9   :  { %4557 = shalt.err (%p4885_p5)  }

</bundles_post_ra>
